<compile_context>
chip_gen: v5e
topology: v5e:2x2
jax: 0.10.0
libtpu: 0.0.40
codegen_flags: <defaults>
</compile_context>

<pallas_src>
import functools

import numpy as np
import jax
import jax.numpy as jnp
from jax import lax
from jax.experimental import pallas as pl
from jax.experimental.pallas import tpu as pltpu


_MAX_SHIFT = 2        # covers the 5x5 conv (pad=2); 3x3 conv / pool use a subset
_NEG_BIG = 1e30       # "-inf" stand-in for the max-pool halo (center tap always valid)
_SUB = 8              # sublane granule


def _round_up(v, m):
    return (v + m - 1) // m * m


def _mask_index(dy, dx):
    return (dy + _MAX_SHIFT) * (2 * _MAX_SHIFT + 1) + (dx + _MAX_SHIFT)


def _make_shift_masks(H, W):
    """(25, H*W) f32 0/1 masks: row _mask_index(dy,dx) is 1 iff (h+dy, w+dx) in-bounds."""
    r = np.arange(H * W) // W
    c = np.arange(H * W) % W
    rows = []
    for dy in range(-_MAX_SHIFT, _MAX_SHIFT + 1):
        for dx in range(-_MAX_SHIFT, _MAX_SHIFT + 1):
            valid = (r + dy >= 0) & (r + dy < H) & (c + dx >= 0) & (c + dx < W)
            rows.append(valid.astype(np.float32))
    return np.stack(rows)


def _shifted(xf, dy, dx, W, L):
    """value[:, p] = xf[:, (p + dy*W + dx) mod L] (lane roll; halo masked by caller)."""
    s = dy * W + dx
    if s % L == 0:
        return xf
    return pltpu.roll(xf, shift=(-s) % L, axis=1)


# ------------------------------ fused kernel --------------------------------

def _inception_kernel(x_ref, masks_ref, pooladd_ref, w_in_ref, b_in_ref,
                      w_all_ref, b_all_ref, o_ref, col_ref,
                      *, H, W, ips, cin_p, c2a_p, c3a_p):
    HW = H * W
    L = ips * HW
    x = x_ref[0]                                            # (cin_p, L)

    # --- stage 1: branch-2/3 input 1x1 convs fused into one MXU matmul ------
    yin = jnp.maximum(
        jnp.dot(w_in_ref[...], x, preferred_element_type=jnp.float32)
        + b_in_ref[...], 0.0)                               # (c2a_p + c3a_p, L)

    n23 = c2a_p + c3a_p
    off_b = cin_p                      # col3 block start
    off_c = off_b + 9 * c2a_p          # col5 block start
    off_d = off_c + 25 * c3a_p         # pooled block start

    # block A: raw x feeds branch 1's 1x1 conv
    col_ref[0:cin_p, :] = x

    # --- shared inner 3x3 taps: one roll of the stacked [p2a | p3a | x] slab
    #     per tap feeds col3, the inner ring of col5, and the max-pool --------
    stk = jnp.concatenate([yin, x], axis=0)                 # (n23 + cin_p, L)
    pooled = x                                              # center tap, unmasked
    for dy in (-1, 0, 1):
        for dx in (-1, 0, 1):
            t3 = (dy + 1) * 3 + (dx + 1)
            t5 = (dy + 2) * 5 + (dx + 2)
            if dy == 0 and dx == 0:
                conv = stk[0:n23]
            else:
                mi = _mask_index(dy, dx)
                rolled = _shifted(stk, dy, dx, W, L)
                conv = rolled[0:n23] * masks_ref[mi:mi + 1, :]
                pooled = jnp.maximum(
                    pooled, rolled[n23:n23 + cin_p] + pooladd_ref[mi:mi + 1, :])
            col_ref[off_b + t3 * c2a_p:off_b + (t3 + 1) * c2a_p, :] = conv[0:c2a_p]
            col_ref[off_c + t5 * c3a_p:off_c + (t5 + 1) * c3a_p, :] = conv[c2a_p:n23]

    # --- the 16 outer taps of the 5x5 conv roll p3a alone --------------------
    p3a = yin[c2a_p:n23]
    for dy in (-2, -1, 0, 1, 2):
        for dx in (-2, -1, 0, 1, 2):
            if abs(dy) <= 1 and abs(dx) <= 1:
                continue
            mi = _mask_index(dy, dx)
            win = _shifted(p3a, dy, dx, W, L) * masks_ref[mi:mi + 1, :]
            t5 = (dy + 2) * 5 + (dx + 2)
            col_ref[off_c + t5 * c3a_p:off_c + (t5 + 1) * c3a_p, :] = win

    # block D: 3x3 stride-1 max-pooled x feeds branch 4's 1x1 conv
    col_ref[off_d:off_d + cin_p, :] = pooled

    # --- ONE block-diagonal matmul covers all four branches; torch.cat(dim=1)
    #     is just the row order of w_all.  Single dense ReLU store per image. -
    y = jnp.maximum(
        jnp.dot(w_all_ref[...], col_ref[...], preferred_element_type=jnp.float32)
        + b_all_ref[...], 0.0)                              # (ctot, L)
    for s in range(ips):
        o_ref[s] = y[:, s * HW:(s + 1) * HW].astype(o_ref.dtype)


# ---------------------------- Inception forward -----------------------------

def init_inception_params(key, in_channels, c1, c2, c3, c4):
    """Deterministic synthetic parameters. Layouts: 1x1 -> (Cin, Cout); kxk -> (kH, kW, Cin, Cout)."""
    ks = jax.random.split(key, 12)
    s = 0.1
    return {
        "p1_1_w": s * jax.random.normal(ks[0], (in_channels, c1), jnp.float32),
        "p1_1_b": s * jax.random.normal(ks[1], (c1,), jnp.float32),
        "p2_1_w": s * jax.random.normal(ks[2], (in_channels, c2[0]), jnp.float32),
        "p2_1_b": s * jax.random.normal(ks[3], (c2[0],), jnp.float32),
        "p2_2_w": s * jax.random.normal(ks[4], (3, 3, c2[0], c2[1]), jnp.float32),
        "p2_2_b": s * jax.random.normal(ks[5], (c2[1],), jnp.float32),
        "p3_1_w": s * jax.random.normal(ks[6], (in_channels, c3[0]), jnp.float32),
        "p3_1_b": s * jax.random.normal(ks[7], (c3[0],), jnp.float32),
        "p3_2_w": s * jax.random.normal(ks[8], (5, 5, c3[0], c3[1]), jnp.float32),
        "p3_2_b": s * jax.random.normal(ks[9], (c3[1],), jnp.float32),
        "p4_2_w": s * jax.random.normal(ks[10], (in_channels, c4), jnp.float32),
        "p4_2_b": s * jax.random.normal(ks[11], (c4,), jnp.float32),
    }


def inception_forward(x_nchw, params):
    """Matches torch Inception.forward; input and output are NCHW."""
    N, Cin, H, W = x_nchw.shape
    HW = H * W
    c1 = params["p1_1_w"].shape[1]
    c2a = params["p2_1_w"].shape[1]
    c2b = params["p2_2_w"].shape[-1]
    c3a = params["p3_1_w"].shape[1]
    c3b = params["p3_2_w"].shape[-1]
    c4 = params["p4_2_w"].shape[1]
    ctot = c1 + c2b + c3b + c4

    cin_p = _round_up(Cin, _SUB)
    c2a_p = _round_up(c2a, _SUB)
    c3a_p = _round_up(c3a, _SUB)
    k_b, k_c = 9 * c2a_p, 25 * c3a_p
    ktot = cin_p + k_b + k_c + cin_p

    # Grid layout: fold batch into the lane axis (single step) on single-TC
    # chips; on v7x shard images across the two TensorCores via the grid.
    try:
        multi_core = "v7" in jax.devices()[0].device_kind.lower()
    except Exception:  # pragma: no cover - defensive
        multi_core = False
    if multi_core and N > 1:
        G, ips = N, 1
    else:
        G, ips = 1, N
    L = ips * HW

    # Input layout (G, cin_p, ips*HW): channels on sublanes, spatial(+batch) on lanes.
    x_flat = x_nchw.reshape(N, Cin, HW)
    if G == 1:
        x_in = jnp.transpose(x_flat, (1, 0, 2)).reshape(1, Cin, L)
    else:
        x_in = x_flat
    x_in = jnp.pad(x_in, ((0, 0), (0, cin_p - Cin), (0, 0)))

    # Halo masks (0/1 for conv taps, additive -1e30 for the pool), tiled per image.
    masks_hw = _make_shift_masks(H, W)                                   # (25, HW)
    masks = jnp.asarray(np.tile(masks_hw, (1, ips)))
    pooladd = jnp.asarray(
        np.tile(((masks_hw - 1.0) * _NEG_BIG).astype(np.float32), (1, ips)))

    f32 = np.float32
    # Stage-1 fused 1x1 weights (p2_1 | p3_1), zero-padded to 8-sublane groups.
    w_in = np.zeros((c2a_p + c3a_p, cin_p), f32)
    w_in[:c2a, :Cin] = np.asarray(params["p2_1_w"]).T
    w_in[c2a_p:c2a_p + c3a, :Cin] = np.asarray(params["p3_1_w"]).T
    b_in = np.zeros((c2a_p + c3a_p, 1), f32)
    b_in[:c2a, 0] = np.asarray(params["p2_1_b"])
    b_in[c2a_p:c2a_p + c3a, 0] = np.asarray(params["p3_1_b"])

    # Second-stage block-diagonal weight over col = [x | col3 | col5 | pooled].
    w2p = np.zeros((3, 3, c2a_p, c2b), f32)
    w2p[:, :, :c2a, :] = np.asarray(params["p2_2_w"])
    w3p = np.zeros((5, 5, c3a_p, c3b), f32)
    w3p[:, :, :c3a, :] = np.asarray(params["p3_2_w"])

    o2, o3, o4 = c1, c1 + c2b, c1 + c2b + c3b
    w_all = np.zeros((ctot, ktot), f32)
    w_all[:c1, :Cin] = np.asarray(params["p1_1_w"]).T
    w_all[o2:o3, cin_p:cin_p + k_b] = w2p.reshape(k_b, c2b).T
    w_all[o3:o4, cin_p + k_b:cin_p + k_b + k_c] = w3p.reshape(k_c, c3b).T
    w_all[o4:, cin_p + k_b + k_c:cin_p + k_b + k_c + Cin] = np.asarray(params["p4_2_w"]).T
    b_all = np.concatenate(
        [np.asarray(params["p1_1_b"]), np.asarray(params["p2_2_b"]),
         np.asarray(params["p3_2_b"]), np.asarray(params["p4_2_b"])]
    ).astype(f32)[:, None]

    w_in = jnp.asarray(w_in); b_in = jnp.asarray(b_in)
    w_all = jnp.asarray(w_all); b_all = jnp.asarray(b_all)

    kern = functools.partial(_inception_kernel, H=H, W=W, ips=ips,
                             cin_p=cin_p, c2a_p=c2a_p, c3a_p=c3a_p)

    def _const(arr):
        zeros = (0,) * arr.ndim
        return pl.BlockSpec(arr.shape, lambda n: zeros)

    out = pl.pallas_call(
        kern,
        out_shape=jax.ShapeDtypeStruct((N, ctot, HW), x_nchw.dtype),
        grid_spec=pltpu.PrefetchScalarGridSpec(
            num_scalar_prefetch=0,
            grid=(G,),
            in_specs=[
                pl.BlockSpec((1, cin_p, L), lambda n: (n, 0, 0)),
                _const(masks), _const(pooladd),
                _const(w_in), _const(b_in), _const(w_all), _const(b_all),
            ],
            out_specs=pl.BlockSpec((ips, ctot, HW), lambda n: (n, 0, 0)),
            scratch_shapes=[pltpu.VMEM((ktot, L), jnp.float32)],  # im2col slab
        ),
        compiler_params=pltpu.CompilerParams(
            dimension_semantics=("parallel",) if G > 1 else ("arbitrary",)),
    )(x_in, masks, pooladd, w_in, b_in, w_all, b_all)

    # (N, Ctot, H*W) -> (N, Ctot, H, W): free reshape, already NCHW.
    return out.reshape(N, ctot, H, W)


# --------------------------------- Reference ---------------------------------

def _conv_ref(x, w, b, pad):
    y = lax.conv_general_dilated(
        x, w, window_strides=(1, 1), padding=[(pad, pad), (pad, pad)],
        dimension_numbers=("NHWC", "HWIO", "NHWC"))
    return jax.nn.relu(y + b)


def inception_ref(x_nchw, params):
    x = jnp.transpose(x_nchw, (0, 2, 3, 1))
    w1x1 = lambda w: w.reshape(1, 1, *w.shape)
    p1 = _conv_ref(x, w1x1(params["p1_1_w"]), params["p1_1_b"], 0)
    p2 = _conv_ref(_conv_ref(x, w1x1(params["p2_1_w"]), params["p2_1_b"], 0),
                   params["p2_2_w"], params["p2_2_b"], 1)
    p3 = _conv_ref(_conv_ref(x, w1x1(params["p3_1_w"]), params["p3_1_b"], 0),
                   params["p3_2_w"], params["p3_2_b"], 2)
    pooled = lax.reduce_window(x, -jnp.inf, lax.max,
                               (1, 3, 3, 1), (1, 1, 1, 1),
                               [(0, 0), (1, 1), (1, 1), (0, 0)])
    p4 = _conv_ref(pooled, w1x1(params["p4_2_w"]), params["p4_2_b"], 0)
    out = jnp.concatenate([p1, p2, p3, p4], axis=-1)
    return jnp.transpose(out, (0, 3, 1, 2))


# ----------------------------------- Driver ----------------------------------

if __name__ == "__main__":
    key = jax.random.PRNGKey(0)
    kx, kp = jax.random.split(key)

    # Small shapes consistent with the module: batch=2, in_channels=4, 16x16 spatial.
    N, Cin, H, W = 2, 4, 16, 16
    c1, c2, c3, c4 = 4, (4, 8), (4, 4), 4

    x = jax.random.normal(kx, (N, Cin, H, W), jnp.float32)   # NCHW like PyTorch
    params = init_inception_params(kp, Cin, c1, c2, c3, c4)

    out = inception_forward(x, params)
    out = jax.block_until_ready(out)

    expected_c = c1 + c2[1] + c3[1] + c4
    assert out.shape == (N, expected_c, H, W), out.shape

    ref = jax.block_until_ready(inception_ref(x, params))
    assert jnp.allclose(out, ref, atol=1e-4, rtol=1e-4), \
        float(jnp.max(jnp.abs(out - ref)))

    print("KERNEL_OK")
</pallas_src>

<mosaic_0001>
module attributes {stable_mosaic.version = 11 : i64} {
  func.func @_inception_kernel(%arg0: i32, %arg1: memref<1x8x512xf32, #tpu.memory_space<vmem>>, %arg2: memref<25x512xf32, #tpu.memory_space<vmem>>, %arg3: memref<25x512xf32, #tpu.memory_space<vmem>>, %arg4: memref<16x8xf32, #tpu.memory_space<vmem>>, %arg5: memref<16x1xf32, #tpu.memory_space<vmem>>, %arg6: memref<20x288xf32, #tpu.memory_space<vmem>>, %arg7: memref<20x1xf32, #tpu.memory_space<vmem>>, %arg8: memref<2x20x256xf32, #tpu.memory_space<vmem>>, %arg9: memref<288x512xf32, #tpu.memory_space<vmem>>) attributes {dimension_semantics = [#tpu.dimension_semantics<arbitrary>], iteration_bounds = array<i64: 1>, scalar_prefetch = 0 : i64, scratch_operands = 1 : i64, tpu.core_type = #tpu.core_type<tc>, window_params = [{transform_indices = @transform_0, window_bounds = array<i64: 1, 8, 512>}, {pipeline_mode = #tpu.pipeline_mode<synchronous>, transform_indices = @transform_1, window_bounds = array<i64: 25, 512>}, {pipeline_mode = #tpu.pipeline_mode<synchronous>, transform_indices = @transform_2, window_bounds = array<i64: 25, 512>}, {pipeline_mode = #tpu.pipeline_mode<synchronous>, transform_indices = @transform_3, window_bounds = array<i64: 16, 8>}, {pipeline_mode = #tpu.pipeline_mode<synchronous>, transform_indices = @transform_4, window_bounds = array<i64: 16, 1>}, {pipeline_mode = #tpu.pipeline_mode<synchronous>, transform_indices = @transform_5, window_bounds = array<i64: 20, 288>}, {pipeline_mode = #tpu.pipeline_mode<synchronous>, transform_indices = @transform_6, window_bounds = array<i64: 20, 1>}, {transform_indices = @transform_7, window_bounds = array<i64: 2, 20, 256>}]} {
    %c0 = arith.constant 0 : index
    %c0_0 = arith.constant 0 : index
    %c0_1 = arith.constant 0 : index
    %0 = vector.load %arg1[%c0, %c0_0, %c0_1] : memref<1x8x512xf32, #tpu.memory_space<vmem>>, vector<1x8x512xf32>
    %1 = vector.shape_cast %0 : vector<1x8x512xf32> to vector<8x512xf32>
    %c0_2 = arith.constant 0 : index
    %c0_3 = arith.constant 0 : index
    %2 = vector.load %arg4[%c0_2, %c0_3] : memref<16x8xf32, #tpu.memory_space<vmem>>, vector<16x8xf32>
    %cst = arith.constant dense<0.000000e+00> : vector<16x512xf32>
    %3 = tpu.matmul %2, %1, %cst {dimension_numbers = #tpu.dot_dimension_numbers<[1], [0], [0], [1], [0, 0, 1, 1], [], []>} : vector<16x8xf32>, vector<8x512xf32>, vector<16x512xf32> -> vector<16x512xf32>
    %c0_4 = arith.constant 0 : index
    %c0_5 = arith.constant 0 : index
    %4 = vector.load %arg5[%c0_4, %c0_5] : memref<16x1xf32, #tpu.memory_space<vmem>>, vector<16x1xf32>
    %5 = vector.broadcast %4 : vector<16x1xf32> to vector<16x512xf32>
    %6 = arith.addf %3, %5 : vector<16x512xf32>
    %cst_6 = arith.constant 0.000000e+00 : f32
    %7 = vector.broadcast %cst_6 : f32 to vector<16x512xf32>
    %8 = arith.maximumf %6, %7 : vector<16x512xf32>
    %c0_7 = arith.constant 0 : index
    %c0_8 = arith.constant 0 : index
    %9 = vector.load %arg9[%c0_7, %c0_8] : memref<288x512xf32, #tpu.memory_space<vmem>>, vector<8x512xf32>
    tpu.vector_store %arg9[%c0_7, %c0_8], %1 {strides = array<i32>} : memref<288x512xf32, #tpu.memory_space<vmem>>, vector<8x512xf32>,
    %10 = tpu.concatenate %8, %1 in 0 : vector<16x512xf32>, vector<8x512xf32> -> vector<24x512xf32>
    %c17_i32 = arith.constant 17 : i32
    %11 = tpu.dynamic_rotate %10 by %c17_i32 dim 1 : vector<24x512xf32>, i32 -> vector<24x512xf32>
    %12 = vector.extract_strided_slice %11 {offsets = [0, 0], sizes = [16, 512], strides = [1, 1]} : vector<24x512xf32> to vector<16x512xf32>
    %c6 = arith.constant 6 : index
    %c0_9 = arith.constant 0 : index
    %13 = vector.load %arg2[%c6, %c0_9] : memref<25x512xf32, #tpu.memory_space<vmem>>, vector<1x512xf32>
    %14 = vector.broadcast %13 : vector<1x512xf32> to vector<16x512xf32>
    %15 = arith.mulf %12, %14 : vector<16x512xf32>
    %16 = vector.extract_strided_slice %11 {offsets = [16, 0], sizes = [8, 512], strides = [1, 1]} : vector<24x512xf32> to vector<8x512xf32>
    %c6_10 = arith.constant 6 : index
    %c0_11 = arith.constant 0 : index
    %17 = vector.load %arg3[%c6_10, %c0_11] : memref<25x512xf32, #tpu.memory_space<vmem>>, vector<1x512xf32>
    %18 = vector.broadcast %17 : vector<1x512xf32> to vector<8x512xf32>
    %19 = arith.addf %16, %18 : vector<8x512xf32>
    %20 = arith.maximumf %1, %19 : vector<8x512xf32>
    %21 = vector.extract_strided_slice %15 {offsets = [0, 0], sizes = [8, 512], strides = [1, 1]} : vector<16x512xf32> to vector<8x512xf32>
    %c8 = arith.constant 8 : index
    %c0_12 = arith.constant 0 : index
    %22 = vector.load %arg9[%c8, %c0_12] : memref<288x512xf32, #tpu.memory_space<vmem>>, vector<8x512xf32>
    tpu.vector_store %arg9[%c8, %c0_12], %21 {strides = array<i32>} : memref<288x512xf32, #tpu.memory_space<vmem>>, vector<8x512xf32>,
    %23 = vector.extract_strided_slice %15 {offsets = [8, 0], sizes = [8, 512], strides = [1, 1]} : vector<16x512xf32> to vector<8x512xf32>
    %c128 = arith.constant 128 : index
    %c0_13 = arith.constant 0 : index
    %24 = vector.load %arg9[%c128, %c0_13] : memref<288x512xf32, #tpu.memory_space<vmem>>, vector<8x512xf32>
    tpu.vector_store %arg9[%c128, %c0_13], %23 {strides = array<i32>} : memref<288x512xf32, #tpu.memory_space<vmem>>, vector<8x512xf32>,
    %c16_i32 = arith.constant 16 : i32
    %25 = tpu.dynamic_rotate %10 by %c16_i32 dim 1 : vector<24x512xf32>, i32 -> vector<24x512xf32>
    %26 = vector.extract_strided_slice %25 {offsets = [0, 0], sizes = [16, 512], strides = [1, 1]} : vector<24x512xf32> to vector<16x512xf32>
    %c7 = arith.constant 7 : index
    %c0_14 = arith.constant 0 : index
    %27 = vector.load %arg2[%c7, %c0_14] : memref<25x512xf32, #tpu.memory_space<vmem>>, vector<1x512xf32>
    %28 = vector.broadcast %27 : vector<1x512xf32> to vector<16x512xf32>
    %29 = arith.mulf %26, %28 : vector<16x512xf32>
    %30 = vector.extract_strided_slice %25 {offsets = [16, 0], sizes = [8, 512], strides = [1, 1]} : vector<24x512xf32> to vector<8x512xf32>
    %c7_15 = arith.constant 7 : index
    %c0_16 = arith.constant 0 : index
    %31 = vector.load %arg3[%c7_15, %c0_16] : memref<25x512xf32, #tpu.memory_space<vmem>>, vector<1x512xf32>
    %32 = vector.broadcast %31 : vector<1x512xf32> to vector<8x512xf32>
    %33 = arith.addf %30, %32 : vector<8x512xf32>
    %34 = arith.maximumf %20, %33 : vector<8x512xf32>
    %35 = vector.extract_strided_slice %29 {offsets = [0, 0], sizes = [8, 512], strides = [1, 1]} : vector<16x512xf32> to vector<8x512xf32>
    %c16 = arith.constant 16 : index
    %c0_17 = arith.constant 0 : index
    %36 = vector.load %arg9[%c16, %c0_17] : memref<288x512xf32, #tpu.memory_space<vmem>>, vector<8x512xf32>
    tpu.vector_store %arg9[%c16, %c0_17], %35 {strides = array<i32>} : memref<288x512xf32, #tpu.memory_space<vmem>>, vector<8x512xf32>,
    %37 = vector.extract_strided_slice %29 {offsets = [8, 0], sizes = [8, 512], strides = [1, 1]} : vector<16x512xf32> to vector<8x512xf32>
    %c136 = arith.constant 136 : index
    %c0_18 = arith.constant 0 : index
    %38 = vector.load %arg9[%c136, %c0_18] : memref<288x512xf32, #tpu.memory_space<vmem>>, vector<8x512xf32>
    tpu.vector_store %arg9[%c136, %c0_18], %37 {strides = array<i32>} : memref<288x512xf32, #tpu.memory_space<vmem>>, vector<8x512xf32>,
    %c15_i32 = arith.constant 15 : i32
    %39 = tpu.dynamic_rotate %10 by %c15_i32 dim 1 : vector<24x512xf32>, i32 -> vector<24x512xf32>
    %40 = vector.extract_strided_slice %39 {offsets = [0, 0], sizes = [16, 512], strides = [1, 1]} : vector<24x512xf32> to vector<16x512xf32>
    %c8_19 = arith.constant 8 : index
    %c0_20 = arith.constant 0 : index
    %41 = vector.load %arg2[%c8_19, %c0_20] : memref<25x512xf32, #tpu.memory_space<vmem>>, vector<1x512xf32>
    %42 = vector.broadcast %41 : vector<1x512xf32> to vector<16x512xf32>
    %43 = arith.mulf %40, %42 : vector<16x512xf32>
    %44 = vector.extract_strided_slice %39 {offsets = [16, 0], sizes = [8, 512], strides = [1, 1]} : vector<24x512xf32> to vector<8x512xf32>
    %c8_21 = arith.constant 8 : index
    %c0_22 = arith.constant 0 : index
    %45 = vector.load %arg3[%c8_21, %c0_22] : memref<25x512xf32, #tpu.memory_space<vmem>>, vector<1x512xf32>
    %46 = vector.broadcast %45 : vector<1x512xf32> to vector<8x512xf32>
    %47 = arith.addf %44, %46 : vector<8x512xf32>
    %48 = arith.maximumf %34, %47 : vector<8x512xf32>
    %49 = vector.extract_strided_slice %43 {offsets = [0, 0], sizes = [8, 512], strides = [1, 1]} : vector<16x512xf32> to vector<8x512xf32>
    %c24 = arith.constant 24 : index
    %c0_23 = arith.constant 0 : index
    %50 = vector.load %arg9[%c24, %c0_23] : memref<288x512xf32, #tpu.memory_space<vmem>>, vector<8x512xf32>
    tpu.vector_store %arg9[%c24, %c0_23], %49 {strides = array<i32>} : memref<288x512xf32, #tpu.memory_space<vmem>>, vector<8x512xf32>,
    %51 = vector.extract_strided_slice %43 {offsets = [8, 0], sizes = [8, 512], strides = [1, 1]} : vector<16x512xf32> to vector<8x512xf32>
    %c144 = arith.constant 144 : index
    %c0_24 = arith.constant 0 : index
    %52 = vector.load %arg9[%c144, %c0_24] : memref<288x512xf32, #tpu.memory_space<vmem>>, vector<8x512xf32>
    tpu.vector_store %arg9[%c144, %c0_24], %51 {strides = array<i32>} : memref<288x512xf32, #tpu.memory_space<vmem>>, vector<8x512xf32>,
    %c1_i32 = arith.constant 1 : i32
    %53 = tpu.dynamic_rotate %10 by %c1_i32 dim 1 : vector<24x512xf32>, i32 -> vector<24x512xf32>
    %54 = vector.extract_strided_slice %53 {offsets = [0, 0], sizes = [16, 512], strides = [1, 1]} : vector<24x512xf32> to vector<16x512xf32>
    %c11 = arith.constant 11 : index
    %c0_25 = arith.constant 0 : index
    %55 = vector.load %arg2[%c11, %c0_25] : memref<25x512xf32, #tpu.memory_space<vmem>>, vector<1x512xf32>
    %56 = vector.broadcast %55 : vector<1x512xf32> to vector<16x512xf32>
    %57 = arith.mulf %54, %56 : vector<16x512xf32>
    %58 = vector.extract_strided_slice %53 {offsets = [16, 0], sizes = [8, 512], strides = [1, 1]} : vector<24x512xf32> to vector<8x512xf32>
    %c11_26 = arith.constant 11 : index
    %c0_27 = arith.constant 0 : index
    %59 = vector.load %arg3[%c11_26, %c0_27] : memref<25x512xf32, #tpu.memory_space<vmem>>, vector<1x512xf32>
    %60 = vector.broadcast %59 : vector<1x512xf32> to vector<8x512xf32>
    %61 = arith.addf %58, %60 : vector<8x512xf32>
    %62 = arith.maximumf %48, %61 : vector<8x512xf32>
    %63 = vector.extract_strided_slice %57 {offsets = [0, 0], sizes = [8, 512], strides = [1, 1]} : vector<16x512xf32> to vector<8x512xf32>
    %c32 = arith.constant 32 : index
    %c0_28 = arith.constant 0 : index
    %64 = vector.load %arg9[%c32, %c0_28] : memref<288x512xf32, #tpu.memory_space<vmem>>, vector<8x512xf32>
    tpu.vector_store %arg9[%c32, %c0_28], %63 {strides = array<i32>} : memref<288x512xf32, #tpu.memory_space<vmem>>, vector<8x512xf32>,
    %65 = vector.extract_strided_slice %57 {offsets = [8, 0], sizes = [8, 512], strides = [1, 1]} : vector<16x512xf32> to vector<8x512xf32>
    %c168 = arith.constant 168 : index
    %c0_29 = arith.constant 0 : index
    %66 = vector.load %arg9[%c168, %c0_29] : memref<288x512xf32, #tpu.memory_space<vmem>>, vector<8x512xf32>
    tpu.vector_store %arg9[%c168, %c0_29], %65 {strides = array<i32>} : memref<288x512xf32, #tpu.memory_space<vmem>>, vector<8x512xf32>,
    %67 = vector.extract_strided_slice %10 {offsets = [0, 0], sizes = [16, 512], strides = [1, 1]} : vector<24x512xf32> to vector<16x512xf32>
    %68 = vector.extract_strided_slice %67 {offsets = [0, 0], sizes = [8, 512], strides = [1, 1]} : vector<16x512xf32> to vector<8x512xf32>
    %c40 = arith.constant 40 : index
    %c0_30 = arith.constant 0 : index
    %69 = vector.load %arg9[%c40, %c0_30] : memref<288x512xf32, #tpu.memory_space<vmem>>, vector<8x512xf32>
    tpu.vector_store %arg9[%c40, %c0_30], %68 {strides = array<i32>} : memref<288x512xf32, #tpu.memory_space<vmem>>, vector<8x512xf32>,
    %70 = vector.extract_strided_slice %67 {offsets = [8, 0], sizes = [8, 512], strides = [1, 1]} : vector<16x512xf32> to vector<8x512xf32>
    %c176 = arith.constant 176 : index
    %c0_31 = arith.constant 0 : index
    %71 = vector.load %arg9[%c176, %c0_31] : memref<288x512xf32, #tpu.memory_space<vmem>>, vector<8x512xf32>
    tpu.vector_store %arg9[%c176, %c0_31], %70 {strides = array<i32>} : memref<288x512xf32, #tpu.memory_space<vmem>>, vector<8x512xf32>,
    %c511_i32 = arith.constant 511 : i32
    %72 = tpu.dynamic_rotate %10 by %c511_i32 dim 1 : vector<24x512xf32>, i32 -> vector<24x512xf32>
    %73 = vector.extract_strided_slice %72 {offsets = [0, 0], sizes = [16, 512], strides = [1, 1]} : vector<24x512xf32> to vector<16x512xf32>
    %c13 = arith.constant 13 : index
    %c0_32 = arith.constant 0 : index
    %74 = vector.load %arg2[%c13, %c0_32] : memref<25x512xf32, #tpu.memory_space<vmem>>, vector<1x512xf32>
    %75 = vector.broadcast %74 : vector<1x512xf32> to vector<16x512xf32>
    %76 = arith.mulf %73, %75 : vector<16x512xf32>
    %77 = vector.extract_strided_slice %72 {offsets = [16, 0], sizes = [8, 512], strides = [1, 1]} : vector<24x512xf32> to vector<8x512xf32>
    %c13_33 = arith.constant 13 : index
    %c0_34 = arith.constant 0 : index
    %78 = vector.load %arg3[%c13_33, %c0_34] : memref<25x512xf32, #tpu.memory_space<vmem>>, vector<1x512xf32>
    %79 = vector.broadcast %78 : vector<1x512xf32> to vector<8x512xf32>
    %80 = arith.addf %77, %79 : vector<8x512xf32>
    %81 = arith.maximumf %62, %80 : vector<8x512xf32>
    %82 = vector.extract_strided_slice %76 {offsets = [0, 0], sizes = [8, 512], strides = [1, 1]} : vector<16x512xf32> to vector<8x512xf32>
    %c48 = arith.constant 48 : index
    %c0_35 = arith.constant 0 : index
    %83 = vector.load %arg9[%c48, %c0_35] : memref<288x512xf32, #tpu.memory_space<vmem>>, vector<8x512xf32>
    tpu.vector_store %arg9[%c48, %c0_35], %82 {strides = array<i32>} : memref<288x512xf32, #tpu.memory_space<vmem>>, vector<8x512xf32>,
    %84 = vector.extract_strided_slice %76 {offsets = [8, 0], sizes = [8, 512], strides = [1, 1]} : vector<16x512xf32> to vector<8x512xf32>
    %c184 = arith.constant 184 : index
    %c0_36 = arith.constant 0 : index
    %85 = vector.load %arg9[%c184, %c0_36] : memref<288x512xf32, #tpu.memory_space<vmem>>, vector<8x512xf32>
    tpu.vector_store %arg9[%c184, %c0_36], %84 {strides = array<i32>} : memref<288x512xf32, #tpu.memory_space<vmem>>, vector<8x512xf32>,
    %c497_i32 = arith.constant 497 : i32
    %86 = tpu.dynamic_rotate %10 by %c497_i32 dim 1 : vector<24x512xf32>, i32 -> vector<24x512xf32>
    %87 = vector.extract_strided_slice %86 {offsets = [0, 0], sizes = [16, 512], strides = [1, 1]} : vector<24x512xf32> to vector<16x512xf32>
    %c16_37 = arith.constant 16 : index
    %c0_38 = arith.constant 0 : index
    %88 = vector.load %arg2[%c16_37, %c0_38] : memref<25x512xf32, #tpu.memory_space<vmem>>, vector<1x512xf32>
    %89 = vector.broadcast %88 : vector<1x512xf32> to vector<16x512xf32>
    %90 = arith.mulf %87, %89 : vector<16x512xf32>
    %91 = vector.extract_strided_slice %86 {offsets = [16, 0], sizes = [8, 512], strides = [1, 1]} : vector<24x512xf32> to vector<8x512xf32>
    %c16_39 = arith.constant 16 : index
    %c0_40 = arith.constant 0 : index
    %92 = vector.load %arg3[%c16_39, %c0_40] : memref<25x512xf32, #tpu.memory_space<vmem>>, vector<1x512xf32>
    %93 = vector.broadcast %92 : vector<1x512xf32> to vector<8x512xf32>
    %94 = arith.addf %91, %93 : vector<8x512xf32>
    %95 = arith.maximumf %81, %94 : vector<8x512xf32>
    %96 = vector.extract_strided_slice %90 {offsets = [0, 0], sizes = [8, 512], strides = [1, 1]} : vector<16x512xf32> to vector<8x512xf32>
    %c56 = arith.constant 56 : index
    %c0_41 = arith.constant 0 : index
    %97 = vector.load %arg9[%c56, %c0_41] : memref<288x512xf32, #tpu.memory_space<vmem>>, vector<8x512xf32>
    tpu.vector_store %arg9[%c56, %c0_41], %96 {strides = array<i32>} : memref<288x512xf32, #tpu.memory_space<vmem>>, vector<8x512xf32>,
    %98 = vector.extract_strided_slice %90 {offsets = [8, 0], sizes = [8, 512], strides = [1, 1]} : vector<16x512xf32> to vector<8x512xf32>
    %c208 = arith.constant 208 : index
    %c0_42 = arith.constant 0 : index
    %99 = vector.load %arg9[%c208, %c0_42] : memref<288x512xf32, #tpu.memory_space<vmem>>, vector<8x512xf32>
    tpu.vector_store %arg9[%c208, %c0_42], %98 {strides = array<i32>} : memref<288x512xf32, #tpu.memory_space<vmem>>, vector<8x512xf32>,
    %c496_i32 = arith.constant 496 : i32
    %100 = tpu.dynamic_rotate %10 by %c496_i32 dim 1 : vector<24x512xf32>, i32 -> vector<24x512xf32>
    %101 = vector.extract_strided_slice %100 {offsets = [0, 0], sizes = [16, 512], strides = [1, 1]} : vector<24x512xf32> to vector<16x512xf32>
    %c17 = arith.constant 17 : index
    %c0_43 = arith.constant 0 : index
    %102 = vector.load %arg2[%c17, %c0_43] : memref<25x512xf32, #tpu.memory_space<vmem>>, vector<1x512xf32>
    %103 = vector.broadcast %102 : vector<1x512xf32> to vector<16x512xf32>
    %104 = arith.mulf %101, %103 : vector<16x512xf32>
    %105 = vector.extract_strided_slice %100 {offsets = [16, 0], sizes = [8, 512], strides = [1, 1]} : vector<24x512xf32> to vector<8x512xf32>
    %c17_44 = arith.constant 17 : index
    %c0_45 = arith.constant 0 : index
    %106 = vector.load %arg3[%c17_44, %c0_45] : memref<25x512xf32, #tpu.memory_space<vmem>>, vector<1x512xf32>
    %107 = vector.broadcast %106 : vector<1x512xf32> to vector<8x512xf32>
    %108 = arith.addf %105, %107 : vector<8x512xf32>
    %109 = arith.maximumf %95, %108 : vector<8x512xf32>
    %110 = vector.extract_strided_slice %104 {offsets = [0, 0], sizes = [8, 512], strides = [1, 1]} : vector<16x512xf32> to vector<8x512xf32>
    %c64 = arith.constant 64 : index
    %c0_46 = arith.constant 0 : index
    %111 = vector.load %arg9[%c64, %c0_46] : memref<288x512xf32, #tpu.memory_space<vmem>>, vector<8x512xf32>
    tpu.vector_store %arg9[%c64, %c0_46], %110 {strides = array<i32>} : memref<288x512xf32, #tpu.memory_space<vmem>>, vector<8x512xf32>,
    %112 = vector.extract_strided_slice %104 {offsets = [8, 0], sizes = [8, 512], strides = [1, 1]} : vector<16x512xf32> to vector<8x512xf32>
    %c216 = arith.constant 216 : index
    %c0_47 = arith.constant 0 : index
    %113 = vector.load %arg9[%c216, %c0_47] : memref<288x512xf32, #tpu.memory_space<vmem>>, vector<8x512xf32>
    tpu.vector_store %arg9[%c216, %c0_47], %112 {strides = array<i32>} : memref<288x512xf32, #tpu.memory_space<vmem>>, vector<8x512xf32>,
    %c495_i32 = arith.constant 495 : i32
    %114 = tpu.dynamic_rotate %10 by %c495_i32 dim 1 : vector<24x512xf32>, i32 -> vector<24x512xf32>
    %115 = vector.extract_strided_slice %114 {offsets = [0, 0], sizes = [16, 512], strides = [1, 1]} : vector<24x512xf32> to vector<16x512xf32>
    %c18 = arith.constant 18 : index
    %c0_48 = arith.constant 0 : index
    %116 = vector.load %arg2[%c18, %c0_48] : memref<25x512xf32, #tpu.memory_space<vmem>>, vector<1x512xf32>
    %117 = vector.broadcast %116 : vector<1x512xf32> to vector<16x512xf32>
    %118 = arith.mulf %115, %117 : vector<16x512xf32>
    %119 = vector.extract_strided_slice %114 {offsets = [16, 0], sizes = [8, 512], strides = [1, 1]} : vector<24x512xf32> to vector<8x512xf32>
    %c18_49 = arith.constant 18 : index
    %c0_50 = arith.constant 0 : index
    %120 = vector.load %arg3[%c18_49, %c0_50] : memref<25x512xf32, #tpu.memory_space<vmem>>, vector<1x512xf32>
    %121 = vector.broadcast %120 : vector<1x512xf32> to vector<8x512xf32>
    %122 = arith.addf %119, %121 : vector<8x512xf32>
    %123 = arith.maximumf %109, %122 : vector<8x512xf32>
    %124 = vector.extract_strided_slice %118 {offsets = [0, 0], sizes = [8, 512], strides = [1, 1]} : vector<16x512xf32> to vector<8x512xf32>
    %c72 = arith.constant 72 : index
    %c0_51 = arith.constant 0 : index
    %125 = vector.load %arg9[%c72, %c0_51] : memref<288x512xf32, #tpu.memory_space<vmem>>, vector<8x512xf32>
    tpu.vector_store %arg9[%c72, %c0_51], %124 {strides = array<i32>} : memref<288x512xf32, #tpu.memory_space<vmem>>, vector<8x512xf32>,
    %126 = vector.extract_strided_slice %118 {offsets = [8, 0], sizes = [8, 512], strides = [1, 1]} : vector<16x512xf32> to vector<8x512xf32>
    %c224 = arith.constant 224 : index
    %c0_52 = arith.constant 0 : index
    %127 = vector.load %arg9[%c224, %c0_52] : memref<288x512xf32, #tpu.memory_space<vmem>>, vector<8x512xf32>
    tpu.vector_store %arg9[%c224, %c0_52], %126 {strides = array<i32>} : memref<288x512xf32, #tpu.memory_space<vmem>>, vector<8x512xf32>,
    %128 = vector.extract_strided_slice %8 {offsets = [8, 0], sizes = [8, 512], strides = [1, 1]} : vector<16x512xf32> to vector<8x512xf32>
    %c34_i32 = arith.constant 34 : i32
    %129 = tpu.dynamic_rotate %128 by %c34_i32 dim 1 : vector<8x512xf32>, i32 -> vector<8x512xf32>
    %c0_53 = arith.constant 0 : index
    %c0_54 = arith.constant 0 : index
    %130 = vector.load %arg2[%c0_53, %c0_54] : memref<25x512xf32, #tpu.memory_space<vmem>>, vector<1x512xf32>
    %131 = vector.broadcast %130 : vector<1x512xf32> to vector<8x512xf32>
    %132 = arith.mulf %129, %131 : vector<8x512xf32>
    %c80 = arith.constant 80 : index
    %c0_55 = arith.constant 0 : index
    %133 = vector.load %arg9[%c80, %c0_55] : memref<288x512xf32, #tpu.memory_space<vmem>>, vector<8x512xf32>
    tpu.vector_store %arg9[%c80, %c0_55], %132 {strides = array<i32>} : memref<288x512xf32, #tpu.memory_space<vmem>>, vector<8x512xf32>,
    %c33_i32 = arith.constant 33 : i32
    %134 = tpu.dynamic_rotate %128 by %c33_i32 dim 1 : vector<8x512xf32>, i32 -> vector<8x512xf32>
    %c1 = arith.constant 1 : index
    %c0_56 = arith.constant 0 : index
    %135 = vector.load %arg2[%c1, %c0_56] : memref<25x512xf32, #tpu.memory_space<vmem>>, vector<1x512xf32>
    %136 = vector.broadcast %135 : vector<1x512xf32> to vector<8x512xf32>
    %137 = arith.mulf %134, %136 : vector<8x512xf32>
    %c88 = arith.constant 88 : index
    %c0_57 = arith.constant 0 : index
    %138 = vector.load %arg9[%c88, %c0_57] : memref<288x512xf32, #tpu.memory_space<vmem>>, vector<8x512xf32>
    tpu.vector_store %arg9[%c88, %c0_57], %137 {strides = array<i32>} : memref<288x512xf32, #tpu.memory_space<vmem>>, vector<8x512xf32>,
    %c32_i32 = arith.constant 32 : i32
    %139 = tpu.dynamic_rotate %128 by %c32_i32 dim 1 : vector<8x512xf32>, i32 -> vector<8x512xf32>
    %c2 = arith.constant 2 : index
    %c0_58 = arith.constant 0 : index
    %140 = vector.load %arg2[%c2, %c0_58] : memref<25x512xf32, #tpu.memory_space<vmem>>, vector<1x512xf32>
    %141 = vector.broadcast %140 : vector<1x512xf32> to vector<8x512xf32>
    %142 = arith.mulf %139, %141 : vector<8x512xf32>
    %c96 = arith.constant 96 : index
    %c0_59 = arith.constant 0 : index
    %143 = vector.load %arg9[%c96, %c0_59] : memref<288x512xf32, #tpu.memory_space<vmem>>, vector<8x512xf32>
    tpu.vector_store %arg9[%c96, %c0_59], %142 {strides = array<i32>} : memref<288x512xf32, #tpu.memory_space<vmem>>, vector<8x512xf32>,
    %c31_i32 = arith.constant 31 : i32
    %144 = tpu.dynamic_rotate %128 by %c31_i32 dim 1 : vector<8x512xf32>, i32 -> vector<8x512xf32>
    %c3 = arith.constant 3 : index
    %c0_60 = arith.constant 0 : index
    %145 = vector.load %arg2[%c3, %c0_60] : memref<25x512xf32, #tpu.memory_space<vmem>>, vector<1x512xf32>
    %146 = vector.broadcast %145 : vector<1x512xf32> to vector<8x512xf32>
    %147 = arith.mulf %144, %146 : vector<8x512xf32>
    %c104 = arith.constant 104 : index
    %c0_61 = arith.constant 0 : index
    %148 = vector.load %arg9[%c104, %c0_61] : memref<288x512xf32, #tpu.memory_space<vmem>>, vector<8x512xf32>
    tpu.vector_store %arg9[%c104, %c0_61], %147 {strides = array<i32>} : memref<288x512xf32, #tpu.memory_space<vmem>>, vector<8x512xf32>,
    %c30_i32 = arith.constant 30 : i32
    %149 = tpu.dynamic_rotate %128 by %c30_i32 dim 1 : vector<8x512xf32>, i32 -> vector<8x512xf32>
    %c4 = arith.constant 4 : index
    %c0_62 = arith.constant 0 : index
    %150 = vector.load %arg2[%c4, %c0_62] : memref<25x512xf32, #tpu.memory_space<vmem>>, vector<1x512xf32>
    %151 = vector.broadcast %150 : vector<1x512xf32> to vector<8x512xf32>
    %152 = arith.mulf %149, %151 : vector<8x512xf32>
    %c112 = arith.constant 112 : index
    %c0_63 = arith.constant 0 : index
    %153 = vector.load %arg9[%c112, %c0_63] : memref<288x512xf32, #tpu.memory_space<vmem>>, vector<8x512xf32>
    tpu.vector_store %arg9[%c112, %c0_63], %152 {strides = array<i32>} : memref<288x512xf32, #tpu.memory_space<vmem>>, vector<8x512xf32>,
    %c18_i32 = arith.constant 18 : i32
    %154 = tpu.dynamic_rotate %128 by %c18_i32 dim 1 : vector<8x512xf32>, i32 -> vector<8x512xf32>
    %c5 = arith.constant 5 : index
    %c0_64 = arith.constant 0 : index
    %155 = vector.load %arg2[%c5, %c0_64] : memref<25x512xf32, #tpu.memory_space<vmem>>, vector<1x512xf32>
    %156 = vector.broadcast %155 : vector<1x512xf32> to vector<8x512xf32>
    %157 = arith.mulf %154, %156 : vector<8x512xf32>
    %c120 = arith.constant 120 : index
    %c0_65 = arith.constant 0 : index
    %158 = vector.load %arg9[%c120, %c0_65] : memref<288x512xf32, #tpu.memory_space<vmem>>, vector<8x512xf32>
    tpu.vector_store %arg9[%c120, %c0_65], %157 {strides = array<i32>} : memref<288x512xf32, #tpu.memory_space<vmem>>, vector<8x512xf32>,
    %c14_i32 = arith.constant 14 : i32
    %159 = tpu.dynamic_rotate %128 by %c14_i32 dim 1 : vector<8x512xf32>, i32 -> vector<8x512xf32>
    %c9 = arith.constant 9 : index
    %c0_66 = arith.constant 0 : index
    %160 = vector.load %arg2[%c9, %c0_66] : memref<25x512xf32, #tpu.memory_space<vmem>>, vector<1x512xf32>
    %161 = vector.broadcast %160 : vector<1x512xf32> to vector<8x512xf32>
    %162 = arith.mulf %159, %161 : vector<8x512xf32>
    %c152 = arith.constant 152 : index
    %c0_67 = arith.constant 0 : index
    %163 = vector.load %arg9[%c152, %c0_67] : memref<288x512xf32, #tpu.memory_space<vmem>>, vector<8x512xf32>
    tpu.vector_store %arg9[%c152, %c0_67], %162 {strides = array<i32>} : memref<288x512xf32, #tpu.memory_space<vmem>>, vector<8x512xf32>,
    %c2_i32 = arith.constant 2 : i32
    %164 = tpu.dynamic_rotate %128 by %c2_i32 dim 1 : vector<8x512xf32>, i32 -> vector<8x512xf32>
    %c10 = arith.constant 10 : index
    %c0_68 = arith.constant 0 : index
    %165 = vector.load %arg2[%c10, %c0_68] : memref<25x512xf32, #tpu.memory_space<vmem>>, vector<1x512xf32>
    %166 = vector.broadcast %165 : vector<1x512xf32> to vector<8x512xf32>
    %167 = arith.mulf %164, %166 : vector<8x512xf32>
    %c160 = arith.constant 160 : index
    %c0_69 = arith.constant 0 : index
    %168 = vector.load %arg9[%c160, %c0_69] : memref<288x512xf32, #tpu.memory_space<vmem>>, vector<8x512xf32>
    tpu.vector_store %arg9[%c160, %c0_69], %167 {strides = array<i32>} : memref<288x512xf32, #tpu.memory_space<vmem>>, vector<8x512xf32>,
    %c510_i32 = arith.constant 510 : i32
    %169 = tpu.dynamic_rotate %128 by %c510_i32 dim 1 : vector<8x512xf32>, i32 -> vector<8x512xf32>
    %c14 = arith.constant 14 : index
    %c0_70 = arith.constant 0 : index
    %170 = vector.load %arg2[%c14, %c0_70] : memref<25x512xf32, #tpu.memory_space<vmem>>, vector<1x512xf32>
    %171 = vector.broadcast %170 : vector<1x512xf32> to vector<8x512xf32>
    %172 = arith.mulf %169, %171 : vector<8x512xf32>
    %c192 = arith.constant 192 : index
    %c0_71 = arith.constant 0 : index
    %173 = vector.load %arg9[%c192, %c0_71] : memref<288x512xf32, #tpu.memory_space<vmem>>, vector<8x512xf32>
    tpu.vector_store %arg9[%c192, %c0_71], %172 {strides = array<i32>} : memref<288x512xf32, #tpu.memory_space<vmem>>, vector<8x512xf32>,
    %c498_i32 = arith.constant 498 : i32
    %174 = tpu.dynamic_rotate %128 by %c498_i32 dim 1 : vector<8x512xf32>, i32 -> vector<8x512xf32>
    %c15 = arith.constant 15 : index
    %c0_72 = arith.constant 0 : index
    %175 = vector.load %arg2[%c15, %c0_72] : memref<25x512xf32, #tpu.memory_space<vmem>>, vector<1x512xf32>
    %176 = vector.broadcast %175 : vector<1x512xf32> to vector<8x512xf32>
    %177 = arith.mulf %174, %176 : vector<8x512xf32>
    %c200 = arith.constant 200 : index
    %c0_73 = arith.constant 0 : index
    %178 = vector.load %arg9[%c200, %c0_73] : memref<288x512xf32, #tpu.memory_space<vmem>>, vector<8x512xf32>
    tpu.vector_store %arg9[%c200, %c0_73], %177 {strides = array<i32>} : memref<288x512xf32, #tpu.memory_space<vmem>>, vector<8x512xf32>,
    %c494_i32 = arith.constant 494 : i32
    %179 = tpu.dynamic_rotate %128 by %c494_i32 dim 1 : vector<8x512xf32>, i32 -> vector<8x512xf32>
    %c19 = arith.constant 19 : index
    %c0_74 = arith.constant 0 : index
    %180 = vector.load %arg2[%c19, %c0_74] : memref<25x512xf32, #tpu.memory_space<vmem>>, vector<1x512xf32>
    %181 = vector.broadcast %180 : vector<1x512xf32> to vector<8x512xf32>
    %182 = arith.mulf %179, %181 : vector<8x512xf32>
    %c232 = arith.constant 232 : index
    %c0_75 = arith.constant 0 : index
    %183 = vector.load %arg9[%c232, %c0_75] : memref<288x512xf32, #tpu.memory_space<vmem>>, vector<8x512xf32>
    tpu.vector_store %arg9[%c232, %c0_75], %182 {strides = array<i32>} : memref<288x512xf32, #tpu.memory_space<vmem>>, vector<8x512xf32>,
    %c482_i32 = arith.constant 482 : i32
    %184 = tpu.dynamic_rotate %128 by %c482_i32 dim 1 : vector<8x512xf32>, i32 -> vector<8x512xf32>
    %c20 = arith.constant 20 : index
    %c0_76 = arith.constant 0 : index
    %185 = vector.load %arg2[%c20, %c0_76] : memref<25x512xf32, #tpu.memory_space<vmem>>, vector<1x512xf32>
    %186 = vector.broadcast %185 : vector<1x512xf32> to vector<8x512xf32>
    %187 = arith.mulf %184, %186 : vector<8x512xf32>
    %c240 = arith.constant 240 : index
    %c0_77 = arith.constant 0 : index
    %188 = vector.load %arg9[%c240, %c0_77] : memref<288x512xf32, #tpu.memory_space<vmem>>, vector<8x512xf32>
    tpu.vector_store %arg9[%c240, %c0_77], %187 {strides = array<i32>} : memref<288x512xf32, #tpu.memory_space<vmem>>, vector<8x512xf32>,
    %c481_i32 = arith.constant 481 : i32
    %189 = tpu.dynamic_rotate %128 by %c481_i32 dim 1 : vector<8x512xf32>, i32 -> vector<8x512xf32>
    %c21 = arith.constant 21 : index
    %c0_78 = arith.constant 0 : index
    %190 = vector.load %arg2[%c21, %c0_78] : memref<25x512xf32, #tpu.memory_space<vmem>>, vector<1x512xf32>
    %191 = vector.broadcast %190 : vector<1x512xf32> to vector<8x512xf32>
    %192 = arith.mulf %189, %191 : vector<8x512xf32>
    %c248 = arith.constant 248 : index
    %c0_79 = arith.constant 0 : index
    %193 = vector.load %arg9[%c248, %c0_79] : memref<288x512xf32, #tpu.memory_space<vmem>>, vector<8x512xf32>
    tpu.vector_store %arg9[%c248, %c0_79], %192 {strides = array<i32>} : memref<288x512xf32, #tpu.memory_space<vmem>>, vector<8x512xf32>,
    %c480_i32 = arith.constant 480 : i32
    %194 = tpu.dynamic_rotate %128 by %c480_i32 dim 1 : vector<8x512xf32>, i32 -> vector<8x512xf32>
    %c22 = arith.constant 22 : index
    %c0_80 = arith.constant 0 : index
    %195 = vector.load %arg2[%c22, %c0_80] : memref<25x512xf32, #tpu.memory_space<vmem>>, vector<1x512xf32>
    %196 = vector.broadcast %195 : vector<1x512xf32> to vector<8x512xf32>
    %197 = arith.mulf %194, %196 : vector<8x512xf32>
    %c256 = arith.constant 256 : index
    %c0_81 = arith.constant 0 : index
    %198 = vector.load %arg9[%c256, %c0_81] : memref<288x512xf32, #tpu.memory_space<vmem>>, vector<8x512xf32>
    tpu.vector_store %arg9[%c256, %c0_81], %197 {strides = array<i32>} : memref<288x512xf32, #tpu.memory_space<vmem>>, vector<8x512xf32>,
    %c479_i32 = arith.constant 479 : i32
    %199 = tpu.dynamic_rotate %128 by %c479_i32 dim 1 : vector<8x512xf32>, i32 -> vector<8x512xf32>
    %c23 = arith.constant 23 : index
    %c0_82 = arith.constant 0 : index
    %200 = vector.load %arg2[%c23, %c0_82] : memref<25x512xf32, #tpu.memory_space<vmem>>, vector<1x512xf32>
    %201 = vector.broadcast %200 : vector<1x512xf32> to vector<8x512xf32>
    %202 = arith.mulf %199, %201 : vector<8x512xf32>
    %c264 = arith.constant 264 : index
    %c0_83 = arith.constant 0 : index
    %203 = vector.load %arg9[%c264, %c0_83] : memref<288x512xf32, #tpu.memory_space<vmem>>, vector<8x512xf32>
    tpu.vector_store %arg9[%c264, %c0_83], %202 {strides = array<i32>} : memref<288x512xf32, #tpu.memory_space<vmem>>, vector<8x512xf32>,
    %c478_i32 = arith.constant 478 : i32
    %204 = tpu.dynamic_rotate %128 by %c478_i32 dim 1 : vector<8x512xf32>, i32 -> vector<8x512xf32>
    %c24_84 = arith.constant 24 : index
    %c0_85 = arith.constant 0 : index
    %205 = vector.load %arg2[%c24_84, %c0_85] : memref<25x512xf32, #tpu.memory_space<vmem>>, vector<1x512xf32>
    %206 = vector.broadcast %205 : vector<1x512xf32> to vector<8x512xf32>
    %207 = arith.mulf %204, %206 : vector<8x512xf32>
    %c272 = arith.constant 272 : index
    %c0_86 = arith.constant 0 : index
    %208 = vector.load %arg9[%c272, %c0_86] : memref<288x512xf32, #tpu.memory_space<vmem>>, vector<8x512xf32>
    tpu.vector_store %arg9[%c272, %c0_86], %207 {strides = array<i32>} : memref<288x512xf32, #tpu.memory_space<vmem>>, vector<8x512xf32>,
    %c280 = arith.constant 280 : index
    %c0_87 = arith.constant 0 : index
    %209 = vector.load %arg9[%c280, %c0_87] : memref<288x512xf32, #tpu.memory_space<vmem>>, vector<8x512xf32>
    tpu.vector_store %arg9[%c280, %c0_87], %123 {strides = array<i32>} : memref<288x512xf32, #tpu.memory_space<vmem>>, vector<8x512xf32>,
    %c0_88 = arith.constant 0 : index
    %c0_89 = arith.constant 0 : index
    %210 = vector.load %arg6[%c0_88, %c0_89] : memref<20x288xf32, #tpu.memory_space<vmem>>, vector<20x288xf32>
    %c0_90 = arith.constant 0 : index
    %c0_91 = arith.constant 0 : index
    %211 = vector.load %arg9[%c0_90, %c0_91] : memref<288x512xf32, #tpu.memory_space<vmem>>, vector<288x512xf32>
    %cst_92 = arith.constant dense<0.000000e+00> : vector<20x512xf32>
    %212 = tpu.matmul %210, %211, %cst_92 {dimension_numbers = #tpu.dot_dimension_numbers<[1], [0], [0], [1], [0, 0, 1, 1], [], []>} : vector<20x288xf32>, vector<288x512xf32>, vector<20x512xf32> -> vector<20x512xf32>
    %c0_93 = arith.constant 0 : index
    %c0_94 = arith.constant 0 : index
    %213 = vector.load %arg7[%c0_93, %c0_94] : memref<20x1xf32, #tpu.memory_space<vmem>>, vector<20x1xf32>
    %214 = vector.broadcast %213 : vector<20x1xf32> to vector<20x512xf32>
    %215 = arith.addf %212, %214 : vector<20x512xf32>
    %cst_95 = arith.constant 0.000000e+00 : f32
    %216 = vector.broadcast %cst_95 : f32 to vector<20x512xf32>
    %217 = arith.maximumf %215, %216 : vector<20x512xf32>
    %218 = vector.extract_strided_slice %217 {offsets = [0, 0], sizes = [20, 256], strides = [1, 1]} : vector<20x512xf32> to vector<20x256xf32>
    %c0_96 = arith.constant 0 : index
    %c0_97 = arith.constant 0 : index
    %c0_98 = arith.constant 0 : index
    %219 = vector.load %arg8[%c0_96, %c0_97, %c0_98] : memref<2x20x256xf32, #tpu.memory_space<vmem>>, vector<1x20x256xf32>
    %220 = vector.shape_cast %219 : vector<1x20x256xf32> to vector<20x256xf32>
    %221 = vector.shape_cast %218 : vector<20x256xf32> to vector<1x20x256xf32>
    tpu.vector_store %arg8[%c0_96, %c0_97, %c0_98], %221 {strides = array<i32>} : memref<2x20x256xf32, #tpu.memory_space<vmem>>, vector<1x20x256xf32>,
    %222 = vector.extract_strided_slice %217 {offsets = [0, 256], sizes = [20, 256], strides = [1, 1]} : vector<20x512xf32> to vector<20x256xf32>
    %c1_99 = arith.constant 1 : index
    %c0_100 = arith.constant 0 : index
    %c0_101 = arith.constant 0 : index
    %223 = vector.load %arg8[%c1_99, %c0_100, %c0_101] : memref<2x20x256xf32, #tpu.memory_space<vmem>>, vector<1x20x256xf32>
    %224 = vector.shape_cast %223 : vector<1x20x256xf32> to vector<20x256xf32>
    %225 = vector.shape_cast %222 : vector<20x256xf32> to vector<1x20x256xf32>
    tpu.vector_store %arg8[%c1_99, %c0_100, %c0_101], %225 {strides = array<i32>} : memref<2x20x256xf32, #tpu.memory_space<vmem>>, vector<1x20x256xf32>,
    return
  }
  func.func @transform_0(%arg0: i32) -> (i32, i32, i32) {
    %c0_i32 = arith.constant 0 : i32
    %c0_i32_0 = arith.constant 0 : i32
    %c0_i32_1 = arith.constant 0 : i32
    return %arg0, %c0_i32, %c0_i32_0 : i32, i32, i32
  }
  func.func @transform_1(%arg0: i32) -> (i32, i32) {
    %c0_i32 = arith.constant 0 : i32
    %c0_i32_0 = arith.constant 0 : i32
    %c0_i32_1 = arith.constant 0 : i32
    return %c0_i32, %c0_i32_0 : i32, i32
  }
  func.func @transform_2(%arg0: i32) -> (i32, i32) {
    %c0_i32 = arith.constant 0 : i32
    %c0_i32_0 = arith.constant 0 : i32
    %c0_i32_1 = arith.constant 0 : i32
    return %c0_i32, %c0_i32_0 : i32, i32
  }
  func.func @transform_3(%arg0: i32) -> (i32, i32) {
    %c0_i32 = arith.constant 0 : i32
    %c0_i32_0 = arith.constant 0 : i32
    %c0_i32_1 = arith.constant 0 : i32
    return %c0_i32, %c0_i32_0 : i32, i32
  }
  func.func @transform_4(%arg0: i32) -> (i32, i32) {
    %c0_i32 = arith.constant 0 : i32
    %c0_i32_0 = arith.constant 0 : i32
    %c0_i32_1 = arith.constant 0 : i32
    return %c0_i32, %c0_i32_0 : i32, i32
  }
  func.func @transform_5(%arg0: i32) -> (i32, i32) {
    %c0_i32 = arith.constant 0 : i32
    %c0_i32_0 = arith.constant 0 : i32
    %c0_i32_1 = arith.constant 0 : i32
    return %c0_i32, %c0_i32_0 : i32, i32
  }
  func.func @transform_6(%arg0: i32) -> (i32, i32) {
    %c0_i32 = arith.constant 0 : i32
    %c0_i32_0 = arith.constant 0 : i32
    %c0_i32_1 = arith.constant 0 : i32
    return %c0_i32, %c0_i32_0 : i32, i32
  }
  func.func @transform_7(%arg0: i32) -> (i32, i32, i32) {
    %c0_i32 = arith.constant 0 : i32
    %c0_i32_0 = arith.constant 0 : i32
    %c0_i32_1 = arith.constant 0 : i32
    return %arg0, %c0_i32, %c0_i32_0 : i32, i32, i32
  }
}

</mosaic_0001>

<bundles_post_ra>
// kernel: tpu_custom_call.1
= control target key start
LH: loop header
LB: loop body
LE: loop exit
PB: predicated region body
PF: predicated region fallthrough
CT: control target
= control target key end

     0   :  { %12 = vsyncpa [#allocation4], 0  ;;  %s3873_s0 = inlined_call_operand.vmem [shape: f32[1,8,512], index: 0, kind: input, shape index: {}]   ;;  %s3874_s1 = inlined_call_operand.hbm [shape: f32[25,512], index: 1, kind: input, shape index: {}]   ;;  %s3875_s2 = inlined_call_operand.hbm [shape: f32[25,512], index: 2, kind: input, shape index: {}]   ;;  %s3876_s3 = inlined_call_operand.vmem [shape: f32[16,8], index: 3, kind: input, shape index: {}]   ;;  %s3877_s4 = inlined_call_operand.vmem [shape: f32[16,1], index: 4, kind: input, shape index: {}]   ;;  %s3878_s5 = inlined_call_operand.hbm [shape: f32[20,288], index: 5, kind: input, shape index: {}]   ;;  %s3879_s6 = inlined_call_operand.vmem [shape: f32[20,1], index: 6, kind: input, shape index: {}]   ;;  %s3880_s7 = inlined_call_operand.vmem [shape: f32[2,20,256], index: 7, kind: output, shape index: {}]  }
   0x1   :  { %13 = vsyncpa [#allocation6], 0  ;;  %s33_s26 = sshll.u32 %s3875_s2, 4  ;;  %s2076_s27 = smov [#allocation5]   ;;  %s34_s26 = int_to_ptr.hbm [resolvable:$true] %s33_s26 }
   0x2   :  { %s35_s28 = sshll.u32 %s2076_s27, 4  ;;  %s20_s8 = sshll.u32 %s3874_s1, 4  ;;  %s36_s28 = int_to_ptr.vmem [resolvable:$true] %s35_s28  ;;  %s21_s8 = int_to_ptr.hbm [resolvable:$true] %s20_s8 }
   0x3   :  { %s2077_s9 = smov 512   ;;  %s2078_s10 = smov 32  }
   0x4   :  { %41 = dma.hbm_to_vmem [thread:$0]  %s34_s26, 2048, %s36_s28, [#allocation6], %s2077_s9, %s2077_s9, %s2078_s10  }
   0x5   :  { %s2079_s11 = smov [#allocation3]   ;;  %s50_s15 = sshll.u32 %s3878_s5, 4  ;;  %s51_s15 = int_to_ptr.hbm [resolvable:$true] %s50_s15 }
   0x6   :  { %s22_s12 = sshll.u32 %s2079_s11, 4  ;;  %s2080_s2 = smov [#allocation7]   ;;  %s23_s12 = int_to_ptr.vmem [resolvable:$true] %s22_s12 }
   0x7   :  { %28 = dma.hbm_to_vmem [thread:$0]  %s21_s8, 2048, %s23_s12, [#allocation4], %s2077_s9, %s2077_s9, %s2078_s10  }
   0x8   :  { %s52_s16 = sshll.u32 %s2080_s2, 4  ;;  %s2081_s17 = smov 384   ;;  %s53_s16 = int_to_ptr.vmem [resolvable:$true] %s52_s16 }
   0x9   :  { %s2082_s1 = smov 24  }
   0xa   :  { %58 = dma.hbm_to_vmem [thread:$0]  %s51_s15, 1152, %s53_s16, [#allocation6], %s2081_s17, %s2081_s17, %s2082_s1  }
   0xb   :  { %2072 = dma.done.wait [#allocation4], 2048  }
   0xc   :  { %2073 = vsyncadd [#allocation4], 4294965248 }
   0xd   :  { %2074 = dma.done.wait [#allocation6], 3200  }
   0xe   :  { %2075 = vsyncadd [#allocation6], 4294964096  ;;  %v2083_v0 = vmov 0   ;;  %v2161_v1 = vld [vmem:[%s3873_s0 + $0x10] sm:$0xff]  ;;  %v2166_v2 = vld [vmem:[%s3873_s0 + $0x18] sm:$0xff]  ;;  %vm91_vm0 = vcmask 64512   ;;  %v226_v28 = vlaneseq }
   0xf   :  { %1988 = vset.pattern.permute.xlu0 %v2083_v0  ;;  %1989 = vset.pattern.permute.xlu1 %v2083_v0  ;;  %v2171_v3 = vld [vmem:[%s3873_s0 + $0x8] sm:$0xff]  ;;  %v2178_v4 = vld [vmem:[%s3873_s0] sm:$0xff]  ;;  %s2084_s27 = smov 17   ;;  %s2087_s12 = smov 1  }
  0x10   :  { %1990 = vset.pattern.permute.xlu2 %v2083_v0  ;;  %159 = vmatpush.msra.mxu2 %v2161_v1  ;;  %v77_v5 = vld [vmem:[%s3876_s3] sm:$0xff]  ;;  %v78_v7 = vld [vmem:[%s3876_s3 + $0x8] sm:$0xff]  ;;  %s2085_s3 = smov 16   ;;  %s2088_s13 = smov 127   ;;  %v2282_v30 = vand.u32 127, %v226_v28 }
  0x11   :  { %182 = vmatpush.msra.mxu3 %v2166_v2  ;;  %212 = vrot.lane.b32.xlu1 %v2171_v3, %s2084_s27  ;;  %v79_v6 = vld [vmem:[%s3877_s4] sm:$0xff]  ;;  %v80_v8 = vld [vmem:[%s3877_s4 + $0x8] sm:$0xff]  ;;  %s2086_s4 = smov 15   ;;  %s2089_s14 = smov 113  }
  0x12   :  { %113 = vmatpush.msra.mxu0 %v2178_v4  ;;  %136 = vmatpush.msra.mxu1 %v2171_v3  ;;  %v2284_v31 = vld [vmem:[#allocation5 + $0x7] ss:$8 sm:$0xf]  ;;  %vm311_vm1 = vcmp.lt.s32.totalorder %v2282_v30, 16  ;;  %vm228_vm2 = vcmp.lt.s32.totalorder %v2282_v30, 17  ;;  %vm394_vm3 = vcmp.lt.s32.totalorder %v2282_v30, 15 }
  0x13   :  { %1915 = vmatmul.msk.f32.vlgmr.msra.gmra.mxu0 %vm91_vm0, %v77_v5  ;;  %1917 = vmatmul.msk.f32.vlgmr.msra.gmra.mxu1 %vm91_vm0, %v77_v5  ;;  %v349_v32 = vperm.slane %v2284_v31, 3  ;;  %v2298_v37 = vld [vmem:[#allocation5 + $0x6] ss:$8 sm:$0xf]  ;;  %v348_v43 = vperm.slane %v2284_v31, 2  ;;  %v346_v58 = vperm.slane %v2284_v31, 0 }
  0x14   :  { %1919 = vmatmul.msk.f32.vlgmr.msra.gmra.mxu2 %vm91_vm0, %v77_v5  ;;  %1921 = vmatmul.msk.f32.vlgmr.msra.gmra.mxu3 %vm91_vm0, %v77_v5  ;;  %v427_v38 = vld [vmem:[#allocation5 + $0x20] ss:$8 sm:$0xf]  ;;  %v265_v39 = vperm.slane %v2298_v37, 2  ;;  %v266_v49 = vperm.slane %v2298_v37, 3  ;;  %v263_v51 = vperm.slane %v2298_v37, 0 }
  0x15   :  { %83 = vperm.xlu0 %1988, %v79_v6   ;;  %206 = vrot.lane.b32.xlu2 %v2178_v4, %s2084_s27  ;;  %v430_v41 = vperm.slane %v427_v38, 1  ;;  %v431_v55 = vperm.slane %v427_v38, 2  ;;  %s2090_s15 = smov 112   ;;  %s2091_s2 = smov 30   ;;  %vm477_vm4 = vcmp.lt.s32.totalorder %v2282_v30, 1  ;;  %vm3962_vm5 = vcmp.lt.s32.totalorder %v2282_v30, 127 }
  0x16   :  { %s2092_s16 = smov 31   ;;  %s2093_s17 = smov 33   ;;  %vm651_vm6 = vcmp.lt.s32.totalorder %v2282_v30, 113  ;;  %vm1043_vm7 = vcmp.lt.s32.totalorder %v2282_v30, 18  ;;  %vm1011_vm8 = vcmp.lt.s32.totalorder %v2282_v30, 30  ;;  %vm979_vm9 = vcmp.lt.s32.totalorder %v2282_v30, 31 }
  0x17   :  { %s2094_s1 = smov 111   ;;  %s2095_s18 = smov 97   ;;  %vm947_vm10 = vcmp.lt.s32.totalorder %v2282_v30, 32  ;;  %vm915_vm11 = vcmp.lt.s32.totalorder %v2282_v30, 33  ;;  %vm734_vm12 = vcmp.lt.s32.totalorder %v2282_v30, 112  ;;  %vm817_vm13 = vcmp.lt.s32.totalorder %v2282_v30, 111 }
  0x18   :  { %s2096_s5 = smov 98   ;;  %s2097_s19 = smov 110   ;;  %vm1267_vm14 = vcmp.lt.s32.totalorder %v2282_v30, 97  ;;  %vm884_vm15 = vcmp.lt.s32.totalorder %v2282_v30, 34 }
  0x19   :  { %218 = vrot.lane.b32.xlu1 %v2161_v1, %s2084_s27  ;;  %s2098_s20 = smov 94   ;;  %s2099_s21 = smov 96  }
  0x1a   :  { %s2100_s22 = smov 18   ;;  %s2101_s23 = smov 114  }
  0x1b   :  { %1916 = vmatmul.msk.f32.gmra.mxu0 %vm91_vm0, %v78_v7  ;;  %1918 = vmatmul.msk.f32.gmra.mxu1 %vm91_vm0, %v78_v7  ;;  %s2102_s24 = smov 126   ;;  %s2103_s25 = smov 34  }
  0x1c   :  { %1920 = vmatmul.msk.f32.gmra.mxu2 %vm91_vm0, %v78_v7  ;;  %1922 = vmatmul.msk.f32.gmra.mxu3 %vm91_vm0, %v78_v7  ;;  %v429_v7 = vperm.slane %v427_v38, 0  ;;  %s2104_s26 = smov 2   ;;  %vm1235_vm0 = vcmp.lt.s32.totalorder %v2282_v30, 98 }
  0x1d   :  { %88 = vperm.xlu0 %1988, %v80_v8   ;;  %v432_v8 = vperm.slane %v427_v38, 3  ;;  %v347_v38 = vperm.slane %v2284_v31, 1 }
  0x21   :  { %224 = vrot.lane.b32.xlu1 %v2166_v2, %s2084_s27 }
  0x29   :  { %291 = vrot.lane.b32.xlu1 %v2178_v4, %s2085_s3 }
  0x31   :  { %297 = vrot.lane.b32.xlu1 %v2171_v3, %s2085_s3 }
  0x39   :  { %303 = vrot.lane.b32.xlu1 %v2161_v1, %s2085_s3 }
  0x41   :  { %309 = vrot.lane.b32.xlu1 %v2166_v2, %s2085_s3 }
  0x49   :  { %374 = vrot.lane.b32.xlu1 %v2178_v4, %s2086_s4 }
  0x51   :  { %380 = vrot.lane.b32.xlu1 %v2171_v3, %s2086_s4 }
  0x59   :  { %386 = vrot.lane.b32.xlu1 %v2161_v1, %s2086_s4 }
  0x61   :  { %392 = vrot.lane.b32.xlu1 %v2166_v2, %s2086_s4 }
  0x69   :  { %457 = vrot.lane.b32.xlu1 %v2178_v4, %s2087_s12 }
  0x6f   :  { %v207_v52 = vpop.permute.xlu2 %206 }
  0x71   :  { %463 = vrot.lane.b32.xlu1 %v2171_v3, %s2087_s12 }
  0x79   :  { %469 = vrot.lane.b32.xlu1 %v2161_v1, %s2087_s12 }
  0x81   :  { %475 = vrot.lane.b32.xlu1 %v2166_v2, %s2087_s12 }
  0x83   :  { %v2234_v9 = vpop.permute.xlu1 %212 }
  0x87   :  { %v2240_v11 = vpop.permute.xlu0 %83 }
  0x89   :  { %548 = vrot.lane.b32.xlu1 %v2178_v4, %s2088_s13 }
  0x8b   :  { %v2238_v10 = vpop.permute.xlu1 %218 }
  0x8c   :  { %v234_v40 = vsel %vm228_vm2, %v2234_v9, %v2238_v10 }
  0x8d   :  { %v273_v42 = vadd.f32 %v265_v39, %v234_v40  ;;  %v510_v39 = vld [vmem:[#allocation5 + $0x23] ss:$8 sm:$0xf] }
  0x8f   :  { %v2250_v18 = vpop.permute.xlu0 %88  ;;  %v277_v48 = vmax.f32 %v2161_v1, %v273_v42  ;;  %v513_v42 = vperm.slane %v510_v39, 1 }
  0x90   :  { %v115_v12 = vpop.f32.mrf.mxu0  ;;  %v138_v13 = vpop.f32.mrf.mxu1 }
  0x91   :  { %v139_v14 = vadd.f32 %v138_v13, %v2240_v11  ;;  %554 = vrot.lane.b32.xlu1 %v2171_v3, %s2088_s13  ;;  %v116_v15 = vadd.f32 %v115_v12, %v2240_v11 }
  0x93   :  { %v2246_v16 = vmax.f32 %v139_v14, 0.0  ;;  %v225_v17 = vpop.permute.xlu1 %224  ;;  %v2252_v19 = vmax.f32 %v116_v15, 0.0 }
  0x94   :  { %v231_v53 = vsel %vm228_vm2, %v2238_v10, %v225_v17  ;;  %v240_v54 = vsel %vm228_vm2, %v225_v17, %v207_v52 }
  0x95   :  { %208 = vrot.lane.b32.xlu2 %v2246_v16, %s2084_s27  ;;  %v274_v56 = vadd.f32 %v266_v49, %v231_v53  ;;  %v271_v60 = vadd.f32 %v263_v51, %v240_v54 }
  0x97   :  { %v278_v0 = vmax.f32 %v2166_v2, %v274_v56  ;;  %v275_v6 = vmax.f32 %v2178_v4, %v271_v60  ;;  %v161_v10 = vpop.f32.mrf.mxu2 }
  0x98   :  { %v118_v20 = vpop.f32.mrf.mxu0  ;;  %v141_v21 = vpop.f32.mrf.mxu1 }
  0x99   :  { %v142_v22 = vadd.f32 %v141_v21, %v2250_v18  ;;  %202 = vrot.lane.b32.xlu1 %v2252_v19, %s2084_s27  ;;  %v119_v23 = vadd.f32 %v118_v20, %v2250_v18 }
  0x9b   :  { %v2258_v24 = vmax.f32 %v142_v22, 0.0  ;;  %v2260_v25 = vpop.permute.xlu1 %291  ;;  %v2266_v26 = vmax.f32 %v119_v23, 0.0  ;;  %v162_v22 = vadd.f32 %v161_v10, %v2240_v11 }
  0x9d   :  { %3968 = vst [vmem:[#allocation10_spill] sm:$0xff] %v2258_v24  ;;  %210 = vrot.lane.b32.xlu0 %v2258_v24, %s2084_s27  ;;  %287 = vrot.lane.b32.xlu2 %v2252_v19, %s2085_s3 }
  0xa1   :  { %204 = vrot.lane.b32.xlu1 %v2266_v26, %s2084_s27 }
  0xa3   :  { %v2270_v27 = vpop.permute.xlu1 %297 }
  0xa5   :  { %289 = vrot.lane.b32.xlu0 %v2266_v26, %s2085_s3  ;;  %293 = vrot.lane.b32.xlu2 %v2246_v16, %s2085_s3 }
  0xa9   :  { %560 = vrot.lane.b32.xlu1 %v2161_v1, %s2088_s13 }
  0xab   :  { %v304_v29 = vpop.permute.xlu1 %303 }
  0xac   :  { %v317_v45 = vsel %vm311_vm1, %v2270_v27, %v304_v29 }
  0xad   :  { %295 = vrot.lane.b32.xlu0 %v2258_v24, %s2085_s3  ;;  %370 = vrot.lane.b32.xlu2 %v2252_v19, %s2086_s4  ;;  %v356_v50 = vadd.f32 %v348_v43, %v317_v45 }
  0xaf   :  { %v2335_v57 = vmax.f32 %v277_v48, %v356_v50  ;;  %v514_v50 = vperm.slane %v510_v39, 2 }
  0xb1   :  { %566 = vrot.lane.b32.xlu1 %v2166_v2, %s2088_s13 }
  0xb3   :  { %v310_v33 = vpop.permute.xlu1 %309 }
  0xb4   :  { %v314_v34 = vsel %vm311_vm1, %v304_v29, %v310_v33  ;;  %v323_v61 = vsel %vm311_vm1, %v310_v33, %v2260_v25  ;;  %v184_v29 = vpop.f32.mrf.mxu3  ;;  %v2379_v33 = vmax.f32 %v162_v22, 0.0 }
  0xb5   :  { %v357_v35 = vadd.f32 %v349_v32, %v314_v34  ;;  %372 = vrot.lane.b32.xlu0 %v2266_v26, %s2086_s4  ;;  %376 = vrot.lane.b32.xlu2 %v2246_v16, %s2086_s4  ;;  %v264_v32 = vperm.slane %v2298_v37, 1  ;;  %v185_v37 = vadd.f32 %v184_v29, %v2240_v11 }
  0xb6   :  { %3969 = vst [vmem:[#allocation11_spill] sm:$0xff] %v2379_v33 }
  0xb7   :  { %v2355_v12 = vmax.f32 %v278_v0, %v357_v35  ;;  %v237_v35 = vsel %vm228_vm2, %v207_v52, %v2234_v9  ;;  %v320_v9 = vsel %vm311_vm1, %v2260_v25, %v2270_v27 }
  0xb8   :  { %v272_v40 = vadd.f32 %v264_v32, %v237_v35  ;;  %v355_v43 = vadd.f32 %v347_v38, %v320_v9 }
  0xb9   :  { %631 = vrot.lane.b32.xlu1 %v2178_v4, %s2089_s14 }
  0xba   :  { %v276_v31 = vmax.f32 %v2171_v3, %v272_v40 }
  0xbb   :  { %v375_v36 = vpop.permute.xlu1 %374 }
  0xbc   :  { %v359_v27 = vmax.f32 %v276_v31, %v355_v43 }
  0xbd   :  { %378 = vrot.lane.b32.xlu0 %v2258_v24, %s2086_s4  ;;  %453 = vrot.lane.b32.xlu2 %v2252_v19, %s2087_s12 }
  0xc1   :  { %637 = vrot.lane.b32.xlu1 %v2171_v3, %s2089_s14 }
  0xc3   :  { %v381_v44 = vpop.permute.xlu1 %380 }
  0xc4   :  { %v403_v46 = vsel %vm394_vm3, %v375_v36, %v381_v44 }
  0xc5   :  { %v2319_v47 = vadd.f32 %v430_v41, %v403_v46  ;;  %455 = vrot.lane.b32.xlu0 %v2266_v26, %s2087_s12  ;;  %459 = vrot.lane.b32.xlu2 %v2246_v16, %s2087_s12  ;;  %v187_v46 = vpop.f32.mrf.mxu3 }
  0xc6   :  { %v188_v49 = vadd.f32 %v187_v46, %v2250_v18 }
  0xc7   :  { %v442_v51 = vmax.f32 %v359_v27, %v2319_v47  ;;  %v512_v47 = vperm.slane %v510_v39, 0 }
  0xc8   :  { %v2413_v52 = vmax.f32 %v188_v49, 0.0  ;;  %v684_v49 = vld [vmem:[#allocation5 + $0x40] ss:$8 sm:$0xf] }
  0xc9   :  { %643 = vrot.lane.b32.xlu1 %v2161_v1, %s2089_s14  ;;  %v354_v1 = vadd.f32 %v346_v58, %v323_v61  ;;  %v515_v58 = vperm.slane %v510_v39, 3 }
  0xca   :  { %3971 = vst [vmem:[#allocation13_spill] sm:$0xff] %v2413_v52 }
  0xcb   :  { %v387_v59 = vpop.permute.xlu1 %386  ;;  %v2357_v14 = vmax.f32 %v275_v6, %v354_v1 }
  0xcc   :  { %v400_v62 = vsel %vm394_vm3, %v381_v44, %v387_v59  ;;  %v2399_v44 = vmax.f32 %v185_v37, 0.0 }
  0xcd   :  { %v2343_v63 = vadd.f32 %v431_v55, %v400_v62  ;;  %461 = vrot.lane.b32.xlu0 %v2258_v24, %s2087_s12  ;;  %544 = vrot.lane.b32.xlu2 %v2252_v19, %s2088_s13 }
  0xce   :  { %3970 = vst [vmem:[#allocation12_spill] sm:$0xff] %v2399_v44 }
  0xcf   :  { %v443_v5 = vmax.f32 %v2335_v57, %v2343_v63 }
  0xd1   :  { %649 = vrot.lane.b32.xlu1 %v2166_v2, %s2089_s14 }
  0xd3   :  { %v393_v13 = vpop.permute.xlu1 %392 }
  0xd4   :  { %v397_v15 = vsel %vm394_vm3, %v387_v59, %v393_v13  ;;  %v406_v17 = vsel %vm394_vm3, %v393_v13, %v375_v36  ;;  %v164_v36 = vpop.f32.mrf.mxu2 }
  0xd5   :  { %v2363_v20 = vadd.f32 %v429_v7, %v406_v17  ;;  %v2365_v21 = vadd.f32 %v432_v8, %v397_v15  ;;  %546 = vrot.lane.b32.xlu0 %v2266_v26, %s2088_s13  ;;  %550 = vrot.lane.b32.xlu2 %v2246_v16, %s2088_s13  ;;  %v165_v41 = vadd.f32 %v164_v36, %v2250_v18  ;;  %v601_v7 = vld [vmem:[#allocation5 + $0x25] ss:$8 sm:$0xf] }
  0xd6   :  { %v603_v10 = vperm.slane %v601_v7, 0  ;;  %v604_v32 = vperm.slane %v601_v7, 1  ;;  %v605_v40 = vperm.slane %v601_v7, 2  ;;  %v606_v37 = vperm.slane %v601_v7, 3 }
  0xd7   :  { %v444_v23 = vmax.f32 %v2355_v12, %v2365_v21  ;;  %v441_v28 = vmax.f32 %v2357_v14, %v2363_v20  ;;  %v2401_v11 = vmax.f32 %v165_v41, 0.0 }
  0xd9   :  { %714 = vrot.lane.b32.xlu1 %v2178_v4, %s2090_s15 }
  0xdb   :  { %v458_v34 = vpop.permute.xlu1 %457 }
  0xdd   :  { %552 = vrot.lane.b32.xlu0 %v2258_v24, %s2088_s13  ;;  %214 = vrot.lane.b32.xlu2 %v2379_v33, %s2084_s27 }
  0xe1   :  { %1003 = vrot.lane.b32.xlu1 %v2266_v26, %s2091_s2 }
  0xe3   :  { %v464_v45 = vpop.permute.xlu1 %463 }
  0xe4   :  { %v486_v48 = vsel %vm477_vm4, %v458_v34, %v464_v45 }
  0xe5   :  { %v521_v25 = vadd.f32 %v513_v42, %v486_v48  ;;  %216 = vrot.lane.b32.xlu0 %v2401_v11, %s2084_s27  ;;  %220 = vrot.lane.b32.xlu2 %v2399_v44, %s2084_s27 }
  0xe7   :  { %v2417_v55 = vmax.f32 %v442_v51, %v521_v25 }
  0xe9   :  { %971 = vrot.lane.b32.xlu1 %v2266_v26, %s2092_s16 }
  0xeb   :  { %v470_v53 = vpop.permute.xlu1 %469 }
  0xec   :  { %v483_v54 = vsel %vm477_vm4, %v464_v45, %v470_v53 }
  0xed   :  { %v522_v56 = vadd.f32 %v514_v50, %v483_v54  ;;  %222 = vrot.lane.b32.xlu0 %v2413_v52, %s2084_s27  ;;  %299 = vrot.lane.b32.xlu2 %v2379_v33, %s2085_s3  ;;  %s2105_s27 = smov 14  }
  0xef   :  { %v2423_v18 = vmax.f32 %v443_v5, %v522_v56  ;;  %v2425_v57 = vpop.permute.xlu2 %208 }
  0xf1   :  { %939 = vrot.lane.b32.xlu1 %v2266_v26, %s2078_s10 }
  0xf3   :  { %v476_v59 = vpop.permute.xlu1 %475 }
  0xf4   :  { %v480_v60 = vsel %vm477_vm4, %v470_v53, %v476_v59  ;;  %v489_v61 = vsel %vm477_vm4, %v476_v59, %v458_v34  ;;  %v686_v53 = vperm.slane %v684_v49, 0 }
  0xf5   :  { %v520_v62 = vadd.f32 %v512_v47, %v489_v61  ;;  %v523_v63 = vadd.f32 %v515_v58, %v480_v60  ;;  %301 = vrot.lane.b32.xlu0 %v2401_v11, %s2085_s3  ;;  %305 = vrot.lane.b32.xlu2 %v2399_v44, %s2085_s3 }
  0xf7   :  { %v2437_v0 = vmax.f32 %v441_v28, %v520_v62  ;;  %v2439_v1 = vmax.f32 %v444_v23, %v523_v63  ;;  %v2441_v5 = vpop.permute.xlu2 %287  ;;  %v687_v63 = vperm.slane %v684_v49, 1 }
  0xf9   :  { %907 = vrot.lane.b32.xlu1 %v2266_v26, %s2093_s17 }
  0xfb   :  { %v549_v6 = vpop.permute.xlu1 %548 }
  0xfd   :  { %307 = vrot.lane.b32.xlu0 %v2413_v52, %s2085_s3  ;;  %382 = vrot.lane.b32.xlu2 %v2379_v33, %s2086_s4 }
  0xff   :  { %v2449_v8 = vpop.permute.xlu2 %293 }
 0x100   :  { %3972 = vst [vmem:[#allocation14_spill] sm:$0xff] %v2449_v8 }
 0x101   :  { %720 = vrot.lane.b32.xlu1 %v2171_v3, %s2090_s15 }
 0x103   :  { %v555_v12 = vpop.permute.xlu1 %554 }
 0x104   :  { %v577_v13 = vsel %vm3962_vm5, %v549_v6, %v555_v12 }
 0x105   :  { %v2456_v14 = vadd.f32 %v603_v10, %v577_v13  ;;  %384 = vrot.lane.b32.xlu0 %v2401_v11, %s2086_s4  ;;  %388 = vrot.lane.b32.xlu2 %v2399_v44, %s2086_s4 }
 0x107   :  { %v615_v15 = vmax.f32 %v2437_v0, %v2456_v14  ;;  %v2464_v17 = vpop.permute.xlu2 %370 }
 0x109   :  { %913 = vrot.lane.b32.xlu1 %v2413_v52, %s2093_s17 }
 0x10b   :  { %v2468_v20 = vpop.permute.xlu1 %202 }
 0x10c   :  { %3973 = vst [vmem:[#allocation15_spill] sm:$0xff] %v2468_v20 }
 0x10d   :  { %390 = vrot.lane.b32.xlu0 %v2413_v52, %s2086_s4  ;;  %465 = vrot.lane.b32.xlu2 %v2379_v33, %s2087_s12 }
 0x10f   :  { %v2474_v21 = vpop.permute.xlu0 %210  ;;  %v2476_v22 = vpop.permute.xlu2 %376 }
 0x110   :  { %3974 = vst [vmem:[#allocation16_spill] sm:$0xff] %v2474_v21 }
 0x111   :  { %3975 = vst [vmem:[#allocation17_spill] sm:$0xff] %v2476_v22  ;;  %803 = vrot.lane.b32.xlu1 %v2171_v3, %s2094_s1 }
 0x113   :  { %v2480_v23 = vpop.permute.xlu1 %204 }
 0x114   :  { %3976 = vst [vmem:[#allocation18_spill] sm:$0xff] %v2480_v23 }
 0x115   :  { %467 = vrot.lane.b32.xlu0 %v2401_v11, %s2087_s12  ;;  %471 = vrot.lane.b32.xlu2 %v2399_v44, %s2087_s12 }
 0x117   :  { %v2486_v28 = vpop.permute.xlu0 %289  ;;  %v2488_v29 = vpop.permute.xlu2 %453 }
 0x118   :  { %3977 = vst [vmem:[#allocation19_spill] sm:$0xff] %v2486_v28 }
 0x119   :  { %1259 = vrot.lane.b32.xlu1 %v2266_v26, %s2095_s18 }
 0x11b   :  { %v561_v34 = vpop.permute.xlu1 %560 }
 0x11c   :  { %v574_v3 = vsel %vm3962_vm5, %v555_v12, %v561_v34 }
 0x11d   :  { %v612_v35 = vadd.f32 %v604_v32, %v574_v3  ;;  %473 = vrot.lane.b32.xlu0 %v2413_v52, %s2087_s12  ;;  %556 = vrot.lane.b32.xlu2 %v2379_v33, %s2088_s13  ;;  %v689_v3 = vperm.slane %v684_v49, 3 }
 0x11f   :  { %v616_v36 = vmax.f32 %v2417_v55, %v612_v35  ;;  %v2499_v38 = vpop.permute.xlu0 %295  ;;  %v2501_v39 = vpop.permute.xlu2 %459  ;;  %v2532_v55 = vld [vmem:[#allocation3 + $0x6] ss:$8 sm:$0xf] }
 0x120   :  { %3978 = vst [vmem:[#allocation20_spill] sm:$0xff] %v2499_v38  ;;  %v246_v47 = vperm.slane %v2532_v55, 2  ;;  %v247_v7 = vperm.slane %v2532_v55, 3 }
 0x121   :  { %722 = vrot.lane.b32.xlu1 %v2379_v33, %s2090_s15 }
 0x123   :  { %v567_v41 = vpop.permute.xlu1 %566 }
 0x124   :  { %v571_v9 = vsel %vm3962_vm5, %v561_v34, %v567_v41  ;;  %v580_v42 = vsel %vm3962_vm5, %v567_v41, %v549_v6  ;;  %v688_v34 = vperm.slane %v684_v49, 2 }
 0x125   :  { %v613_v43 = vadd.f32 %v605_v40, %v571_v9  ;;  %v614_v31 = vadd.f32 %v606_v37, %v580_v42  ;;  %558 = vrot.lane.b32.xlu0 %v2401_v11, %s2088_s13  ;;  %562 = vrot.lane.b32.xlu2 %v2399_v44, %s2088_s13 }
 0x127   :  { %v617_v45 = vmax.f32 %v2423_v18, %v613_v43  ;;  %v618_v46 = vmax.f32 %v2439_v1, %v614_v31  ;;  %v2515_v48 = vpop.permute.xlu0 %372  ;;  %v2517_v25 = vpop.permute.xlu2 %544 }
 0x128   :  { %3979 = vst [vmem:[#allocation21_spill] sm:$0xff] %v2515_v48 }
 0x129   :  { %3980 = vst [vmem:[#allocation22_spill] sm:$0xff] %v2517_v25  ;;  %1229 = vrot.lane.b32.xlu1 %v2258_v24, %s2096_s5 }
 0x12b   :  { %v632_v27 = vpop.permute.xlu1 %631 }
 0x12d   :  { %564 = vrot.lane.b32.xlu0 %v2413_v52, %s2088_s13  ;;  %627 = vrot.lane.b32.xlu2 %v2252_v19, %s2089_s14 }
 0x12f   :  { %v2525_v50 = vpop.permute.xlu0 %378  ;;  %v2527_v51 = vpop.permute.xlu2 %550 }
 0x130   :  { %3981 = vst [vmem:[#allocation23_spill] sm:$0xff] %v2525_v50 }
 0x131   :  { %1197 = vrot.lane.b32.xlu1 %v2258_v24, %s2097_s19 }
 0x133   :  { %v638_v54 = vpop.permute.xlu1 %637 }
 0x134   :  { %v660_v56 = vsel %vm651_vm6, %v632_v27, %v638_v54 }
 0x135   :  { %v694_v18 = vadd.f32 %v686_v53, %v660_v56  ;;  %629 = vrot.lane.b32.xlu0 %v2266_v26, %s2089_s14  ;;  %633 = vrot.lane.b32.xlu2 %v2246_v16, %s2089_s14 }
 0x137   :  { %v2541_v58 = vmax.f32 %v615_v15, %v694_v18  ;;  %v2543_v59 = vpop.permute.xlu0 %455  ;;  %v215_v60 = vpop.permute.xlu2 %214 }
 0x138   :  { %3982 = vst [vmem:[#allocation24_spill] sm:$0xff] %v2543_v59  ;;  %v232_v61 = vsel %vm228_vm2, %v2425_v57, %v215_v60 }
 0x139   :  { %v2548_v62 = vmul.f32 %v246_v47, %v232_v61  ;;  %1357 = vrot.lane.b32.xlu1 %v2258_v24, %s2098_s20 }
 0x13b   :  { %3983 = vst [vmem:[#allocation25_spill] sm:$0xff] %v2548_v62  ;;  %v644_v0 = vpop.permute.xlu1 %643 }
 0x13c   :  { %v657_v1 = vsel %vm651_vm6, %v638_v54, %v644_v0 }
 0x13d   :  { %v695_v6 = vadd.f32 %v687_v63, %v657_v1  ;;  %635 = vrot.lane.b32.xlu0 %v2258_v24, %s2089_s14  ;;  %639 = vrot.lane.b32.xlu2 %v2379_v33, %s2089_s14 }
 0x13f   :  { %v2559_v10 = vmax.f32 %v616_v36, %v695_v6  ;;  %v2561_v12 = vpop.permute.xlu0 %461  ;;  %v221_v13 = vpop.permute.xlu2 %220 }
 0x140   :  { %3985 = vst [vmem:[#allocation27_spill] sm:$0xff] %v2561_v12  ;;  %v229_v14 = vsel %vm228_vm2, %v215_v60, %v221_v13  ;;  %v2568_v15 = vsel %vm228_vm2, %v221_v13, %v2468_v20  ;;  %v3881_v13 = vperm.slane %v2532_v55, 0 }
 0x141   :  { %3984 = vst [vmem:[#allocation26_spill] sm:$0xff] %v2559_v10  ;;  %v2570_v32 = vmul.f32 %v247_v7, %v229_v14  ;;  %1199 = vrot.lane.b32.xlu1 %v2401_v11, %s2097_s19 }
 0x142   :  { %3986 = vst [vmem:[#allocation28_spill] sm:$0xff] %v2568_v15 }
 0x143   :  { %3987 = vst [vmem:[#allocation29_spill] sm:$0xff] %v2570_v32  ;;  %v650_v35 = vpop.permute.xlu1 %649 }
 0x144   :  { %v654_v36 = vsel %vm651_vm6, %v644_v0, %v650_v35  ;;  %v663_v40 = vsel %vm651_vm6, %v650_v35, %v632_v27 }
 0x145   :  { %v696_v37 = vadd.f32 %v688_v34, %v654_v36  ;;  %v697_v41 = vadd.f32 %v689_v3, %v663_v40  ;;  %641 = vrot.lane.b32.xlu0 %v2401_v11, %s2089_s14  ;;  %645 = vrot.lane.b32.xlu2 %v2399_v44, %s2089_s14  ;;  %v2671_v40 = vld [vmem:[#allocation3 + $0x7] ss:$8 sm:$0xf] }
 0x147   :  { %v2582_v9 = vmax.f32 %v617_v45, %v696_v37  ;;  %v2584_v42 = vmax.f32 %v618_v46, %v697_v41  ;;  %v2586_v43 = vpop.permute.xlu0 %546  ;;  %v2588_v31 = vpop.permute.xlu2 %299 }
 0x148   :  { %3990 = vst [vmem:[#allocation32_spill] sm:$0xff] %v2586_v43 }
 0x149   :  { %3988 = vst [vmem:[#allocation30_spill] sm:$0xff] %v2582_v9  ;;  %718 = vrot.lane.b32.xlu1 %v2258_v24, %s2090_s15 }
 0x14a   :  { %3989 = vst [vmem:[#allocation31_spill] sm:$0xff] %v2584_v42  ;;  %v2785_v42 = vld [vmem:[#allocation3 + $0x40] ss:$8 sm:$0xf] }
 0x14b   :  { %3991 = vst [vmem:[#allocation33_spill] sm:$0xff] %v2588_v31  ;;  %v2592_v27 = vpop.permute.xlu1 %714 }
 0x14d   :  { %647 = vrot.lane.b32.xlu0 %v2413_v52, %s2089_s14  ;;  %710 = vrot.lane.b32.xlu2 %v2252_v19, %s2090_s15 }
 0x14f   :  { %v2598_v49 = vpop.permute.xlu0 %552  ;;  %v2600_v45 = vpop.permute.xlu2 %305 }
 0x150   :  { %3992 = vst [vmem:[#allocation34_spill] sm:$0xff] %v2598_v49  ;;  %v2606_v46 = vsel %vm311_vm1, %v2588_v31, %v2600_v45 }
 0x151   :  { %3993 = vst [vmem:[#allocation35_spill] sm:$0xff] %v2606_v46  ;;  %1293 = vrot.lane.b32.xlu1 %v2258_v24, %s2099_s21 }
 0x153   :  { %v2610_v53 = vpop.permute.xlu1 %1003 }
 0x155   :  { %712 = vrot.lane.b32.xlu0 %v2266_v26, %s2090_s15  ;;  %1035 = vrot.lane.b32.xlu2 %v2266_v26, %s2100_s22 }
 0x157   :  { %v217_v54 = vpop.permute.xlu0 %216  ;;  %v2616_v56 = vpop.permute.xlu2 %382 }
 0x158   :  { %3994 = vst [vmem:[#allocation36_spill] sm:$0xff] %v2616_v56  ;;  %v233_v18 = vsel %vm228_vm2, %v2474_v21, %v217_v54 }
 0x159   :  { %v2621_v60 = vmul.f32 %v246_v47, %v233_v18  ;;  %1165 = vrot.lane.b32.xlu1 %v2258_v24, %s2101_s23 }
 0x15b   :  { %3995 = vst [vmem:[#allocation37_spill] sm:$0xff] %v2621_v60  ;;  %v2625_v61 = vpop.permute.xlu1 %971  ;;  %v669_v60 = vperm.slane %v2785_v42, 2 }
 0x15d   :  { %1037 = vrot.lane.b32.xlu0 %v2258_v24, %s2100_s22  ;;  %1005 = vrot.lane.b32.xlu2 %v2258_v24, %s2091_s2 }
 0x15f   :  { %v223_v63 = vpop.permute.xlu0 %222  ;;  %v2631_v0 = vpop.permute.xlu2 %388 }
 0x160   :  { %v230_v1 = vsel %vm228_vm2, %v217_v54, %v223_v63  ;;  %v239_v47 = vsel %vm228_vm2, %v223_v63, %v2480_v23  ;;  %v2642_v6 = vsel %vm394_vm3, %v2616_v56, %v2631_v0 }
 0x161   :  { %3996 = vst [vmem:[#allocation38_spill] sm:$0xff] %v2642_v6  ;;  %v2645_v14 = vmul.f32 %v247_v7, %v230_v1  ;;  %1133 = vrot.lane.b32.xlu1 %v2258_v24, %s2102_s24  ;;  %v2651_v34 = vmul.f32 %v3881_v13, %v239_v47  ;;  %v3883_v1 = vperm.slane %v2671_v40, 0 }
 0x163   :  { %3997 = vst [vmem:[#allocation39_spill] sm:$0xff] %v2645_v14  ;;  %v2653_v3 = vpop.permute.xlu1 %939 }
 0x164   :  { %3998 = vst [vmem:[#allocation40_spill] sm:$0xff] %v2651_v34 }
 0x165   :  { %1041 = vrot.lane.b32.xlu0 %v2413_v52, %s2100_s22  ;;  %973 = vrot.lane.b32.xlu2 %v2258_v24, %s2092_s16 }
 0x167   :  { %v2659_v35 = vpop.permute.xlu0 %301  ;;  %v2661_v7 = vpop.permute.xlu2 %465 }
 0x168   :  { %3999 = vst [vmem:[#allocation41_spill] sm:$0xff] %v2659_v35 }
 0x169   :  { %4000 = vst [vmem:[#allocation42_spill] sm:$0xff] %v2661_v7  ;;  %1135 = vrot.lane.b32.xlu1 %v2401_v11, %s2102_s24 }
 0x16b   :  { %v2665_v36 = vpop.permute.xlu1 %907 }
 0x16d   :  { %1009 = vrot.lane.b32.xlu0 %v2413_v52, %s2091_s2  ;;  %941 = vrot.lane.b32.xlu2 %v2258_v24, %s2078_s10 }
 0x16f   :  { %v308_v37 = vpop.permute.xlu0 %307  ;;  %v2673_v41 = vpop.permute.xlu2 %471 }
 0x170   :  { %v2678_v54 = vsel %vm311_vm1, %v2659_v35, %v308_v37  ;;  %v322_v18 = vsel %vm311_vm1, %v308_v37, %v2486_v28  ;;  %v2687_v63 = vsel %vm477_vm4, %v2661_v7, %v2673_v41  ;;  %v670_v35 = vperm.slane %v2785_v42, 3 }
 0x171   :  { %4001 = vst [vmem:[#allocation43_spill] sm:$0xff] %v2678_v54  ;;  %730 = vrot.lane.b32.xlu1 %v2413_v52, %s2090_s15  ;;  %v2694_v47 = vmul.f32 %v3883_v1, %v322_v18  ;;  %v2714_v18 = vld [vmem:[#allocation3 + $0x20] ss:$8 sm:$0xf] }
 0x172   :  { %4002 = vst [vmem:[#allocation44_spill] sm:$0xff] %v2687_v63  ;;  %v3887_v62 = vperm.slane %v2714_v18, 0 }
 0x173   :  { %4003 = vst [vmem:[#allocation45_spill] sm:$0xff] %v2694_v47  ;;  %v2696_v13 = vpop.permute.xlu1 %720 }
 0x174   :  { %4004 = vst [vmem:[#allocation46_spill] sm:$0xff] %v2696_v13 }
 0x175   :  { %977 = vrot.lane.b32.xlu0 %v2413_v52, %s2092_s16  ;;  %909 = vrot.lane.b32.xlu2 %v2258_v24, %s2093_s17 }
 0x177   :  { %v2702_v37 = vpop.permute.xlu0 %384  ;;  %v2704_v14 = vpop.permute.xlu2 %556 }
 0x178   :  { %4005 = vst [vmem:[#allocation47_spill] sm:$0xff] %v2702_v37 }
 0x179   :  { %1039 = vrot.lane.b32.xlu1 %v2401_v11, %s2100_s22 }
 0x17b   :  { %v2708_v54 = vpop.permute.xlu1 %913 }
 0x17c   :  { %4006 = vst [vmem:[#allocation48_spill] sm:$0xff] %v2708_v54 }
 0x17d   :  { %945 = vrot.lane.b32.xlu0 %v2413_v52, %s2078_s10  ;;  %876 = vrot.lane.b32.xlu2 %v2266_v26, %s2103_s25 }
 0x17f   :  { %v391_v1 = vpop.permute.xlu0 %390  ;;  %v2716_v32 = vpop.permute.xlu2 %562 }
 0x180   :  { %4007 = vst [vmem:[#allocation49_spill] sm:$0xff] %v2716_v32  ;;  %v2721_v46 = vsel %vm394_vm3, %v2702_v37, %v391_v1  ;;  %v405_v6 = vsel %vm394_vm3, %v391_v1, %v2515_v48  ;;  %v2730_v63 = vsel %vm3962_vm5, %v2704_v14, %v2716_v32 }
 0x181   :  { %4008 = vst [vmem:[#allocation50_spill] sm:$0xff] %v2721_v46  ;;  %1101 = vrot.lane.b32.xlu1 %v2258_v24, %s2104_s26  ;;  %v2737_v31 = vmul.f32 %v3887_v62, %v405_v6 }
 0x182   :  { %4009 = vst [vmem:[#allocation51_spill] sm:$0xff] %v2730_v63 }
 0x183   :  { %4010 = vst [vmem:[#allocation52_spill] sm:$0xff] %v2737_v31  ;;  %v2739_v46 = vpop.permute.xlu1 %803 }
 0x184   :  { %4011 = vst [vmem:[#allocation53_spill] sm:$0xff] %v2739_v46 }
 0x185   :  { %878 = vrot.lane.b32.xlu0 %v2258_v24, %s2103_s25  ;;  %797 = vrot.lane.b32.xlu2 %v2178_v4, %s2094_s1 }
 0x187   :  { %v2745_v1 = vpop.permute.xlu0 %467  ;;  %v628_v32 = vpop.permute.xlu2 %627 }
 0x188   :  { %4012 = vst [vmem:[#allocation54_spill] sm:$0xff] %v2745_v1 }
 0x189   :  { %1069 = vrot.lane.b32.xlu1 %v2258_v24, %s2105_s27 }
 0x18b   :  { %v2749_v56 = vpop.permute.xlu1 %1259 }
 0x18d   :  { %799 = vrot.lane.b32.xlu0 %v2246_v16, %s2094_s1  ;;  %805 = vrot.lane.b32.xlu2 %v2379_v33, %s2094_s1 }
 0x18f   :  { %v2755_v6 = vpop.permute.xlu0 %473  ;;  %v634_v62 = vpop.permute.xlu2 %633 }
 0x190   :  { %4013 = vst [vmem:[#allocation55_spill] sm:$0xff] %v2755_v6  ;;  %v2761_v4 = vsel %vm477_vm4, %v2745_v1, %v2755_v6  ;;  %v2765_v7 = vsel %vm651_vm6, %v628_v32, %v634_v62 }
 0x191   :  { %4014 = vst [vmem:[#allocation56_spill] sm:$0xff] %v2761_v4  ;;  %943 = vrot.lane.b32.xlu1 %v2401_v11, %s2078_s10  ;;  %s2106_s10 = smov 95  }
 0x193   :  { %v2769_v63 = vpop.permute.xlu1 %722 }
 0x195   :  { %882 = vrot.lane.b32.xlu0 %v2413_v52, %s2103_s25  ;;  %1261 = vrot.lane.b32.xlu2 %v2258_v24, %s2095_s18 }
 0x197   :  { %v2775_v33 = vpop.permute.xlu0 %558  ;;  %v640_v9 = vpop.permute.xlu2 %639 }
 0x198   :  { %4015 = vst [vmem:[#allocation57_spill] sm:$0xff] %v2775_v33  ;;  %v2779_v4 = vsel %vm651_vm6, %v634_v62, %v640_v9 }
 0x199   :  { %880 = vrot.lane.b32.xlu1 %v2401_v11, %s2103_s25 }
 0x19b   :  { %v2783_v10 = vpop.permute.xlu1 %1229 }
 0x19d   :  { %716 = vrot.lane.b32.xlu0 %v2246_v16, %s2090_s15  ;;  %793 = vrot.lane.b32.xlu2 %v2252_v19, %s2094_s1 }
 0x19f   :  { %v2793_v34 = vpop.permute.xlu0 %564  ;;  %v646_v62 = vpop.permute.xlu2 %645 }
 0x1a0   :  { %4016 = vst [vmem:[#allocation58_spill] sm:$0xff] %v2793_v34  ;;  %v2799_v37 = vsel %vm3962_vm5, %v2775_v33, %v2793_v34  ;;  %v652_v47 = vsel %vm651_vm6, %v640_v9, %v646_v62  ;;  %v661_v31 = vsel %vm651_vm6, %v646_v62, %v628_v32 }
 0x1a1   :  { %4017 = vst [vmem:[#allocation59_spill] sm:$0xff] %v2799_v37  ;;  %v2805_v1 = vmul.f32 %v669_v60, %v652_v47  ;;  %v2807_v23 = vmul.f32 %v670_v35, %v661_v31  ;;  %811 = vrot.lane.b32.xlu1 %v2399_v44, %s2094_s1 }
 0x1a3   :  { %4018 = vst [vmem:[#allocation60_spill] sm:$0xff] %v2805_v1  ;;  %v2811_v21 = vpop.permute.xlu1 %1197 }
 0x1a4   :  { %4019 = vst [vmem:[#allocation61_spill] sm:$0xff] %v2807_v23 }
 0x1a5   :  { %4020 = vst [vmem:[#allocation62_spill] sm:$0xff] %v2811_v21  ;;  %1227 = vrot.lane.b32.xlu0 %v2266_v26, %s2096_s5  ;;  %1263 = vrot.lane.b32.xlu2 %v2401_v11, %s2095_s18 }
 0x1a7   :  { %v630_v34 = vpop.permute.xlu0 %629  ;;  %v2817_v9 = vpop.permute.xlu2 %710 }
 0x1a8   :  { %4021 = vst [vmem:[#allocation63_spill] sm:$0xff] %v2817_v9 }
 0x1a9   :  { %1359 = vrot.lane.b32.xlu1 %v2401_v11, %s2098_s20 }
 0x1ab   :  { %v2821_v32 = vpop.permute.xlu1 %1357 }
 0x1ac   :  { %4022 = vst [vmem:[#allocation64_spill] sm:$0xff] %v2821_v32 }
 0x1ad   :  { %1195 = vrot.lane.b32.xlu0 %v2266_v26, %s2097_s19  ;;  %1231 = vrot.lane.b32.xlu2 %v2401_v11, %s2096_s5 }
 0x1af   :  { %v636_v31 = vpop.permute.xlu0 %635  ;;  %v2827_v47 = vpop.permute.xlu2 %1035 }
 0x1b0   :  { %v2831_v62 = vsel %vm651_vm6, %v630_v34, %v636_v31 }
 0x1b1   :  { %4023 = vst [vmem:[#allocation65_spill] sm:$0xff] %v2831_v62  ;;  %732 = vrot.lane.b32.xlu1 %v2166_v2, %s2090_s15 }
 0x1b3   :  { %v2835_v23 = vpop.permute.xlu1 %1199 }
 0x1b4   :  { %4024 = vst [vmem:[#allocation66_spill] sm:$0xff] %v2835_v23 }
 0x1b5   :  { %1355 = vrot.lane.b32.xlu0 %v2266_v26, %s2098_s20  ;;  %795 = vrot.lane.b32.xlu2 %v2266_v26, %s2094_s1 }
 0x1b7   :  { %v642_v1 = vpop.permute.xlu0 %641  ;;  %v2841_v37 = vpop.permute.xlu2 %1005 }
 0x1b8   :  { %4025 = vst [vmem:[#allocation67_spill] sm:$0xff] %v2841_v37  ;;  %v2845_v28 = vsel %vm651_vm6, %v636_v31, %v642_v1 }
 0x1b9   :  { %4026 = vst [vmem:[#allocation68_spill] sm:$0xff] %v2845_v28  ;;  %1329 = vrot.lane.b32.xlu1 %v2413_v52, %s2106_s10  ;;  %v2904_v28 = vld [vmem:[#allocation3 + $0x2] ss:$8 sm:$0xf] }
 0x1bb   :  { %v2849_v2 = vpop.permute.xlu1 %718 }
 0x1bc   :  { %4027 = vst [vmem:[#allocation69_spill] sm:$0xff] %v2849_v2 }
 0x1bd   :  { %801 = vrot.lane.b32.xlu0 %v2258_v24, %s2094_s1  ;;  %1323 = vrot.lane.b32.xlu2 %v2266_v26, %s2106_s10 }
 0x1bf   :  { %v648_v38 = vpop.permute.xlu0 %647  ;;  %v2855_v48 = vpop.permute.xlu2 %973 }
 0x1c0   :  { %4028 = vst [vmem:[#allocation70_spill] sm:$0xff] %v2855_v48  ;;  %v653_v50 = vsel %vm651_vm6, %v642_v1, %v648_v38  ;;  %v662_v31 = vsel %vm651_vm6, %v648_v38, %v630_v34  ;;  %v2875_v1 = vld [vmem:[#allocation3 + $0x5] ss:$8 sm:$0xf]  ;;  %v982_v23 = vsel %vm979_vm9, %v2625_v61, %v2855_v48  ;;  %vm1203_vm6 = vcmp.lt.s32.totalorder %v2282_v30, 110 }
 0x1c1   :  { %v2861_v6 = vmul.f32 %v669_v60, %v653_v50  ;;  %v2863_v59 = vmul.f32 %v670_v35, %v662_v31  ;;  %v1052_v38 = vperm.slane %v2875_v1, 1  ;;  %v2885_v50 = vld [vmem:[#allocation3 + $0x4] ss:$8 sm:$0xf] }
 0x1c2   :  { %v2892_v35 = vld [vmem:[#allocation3 + $0x3] ss:$8 sm:$0xf]  ;;  %v2924_v48 = vld [vmem:[#allocation3 + $0x1] ss:$8 sm:$0xf] }
 0x1c3   :  { %4029 = vst [vmem:[#allocation71_spill] sm:$0xff] %v2861_v6  ;;  %v2865_v12 = vpop.permute.xlu1 %1293  ;;  %v1014_v6 = vsel %vm1011_vm8, %v2610_v53, %v2841_v37 }
 0x1c4   :  { %4030 = vst [vmem:[#allocation72_spill] sm:$0xff] %v2863_v59  ;;  %v1020_v59 = vperm.slane %v2885_v50, 1 }
 0x1c5   :  { %4031 = vst [vmem:[#allocation73_spill] sm:$0xff] %v2865_v12  ;;  %1325 = vrot.lane.b32.xlu0 %v2258_v24, %s2106_s10  ;;  %807 = vrot.lane.b32.xlu2 %v2401_v11, %s2094_s1 }
 0x1c6   :  { %v1028_v62 = vmul.f32 %v1020_v59, %v1014_v6  ;;  %v924_v6 = vperm.slane %v2924_v48, 1 }
 0x1c7   :  { %v2871_v43 = vpop.permute.xlu0 %712  ;;  %v2873_v49 = vpop.permute.xlu2 %941 }
 0x1c8   :  { %4032 = vst [vmem:[#allocation74_spill] sm:$0xff] %v2871_v43  ;;  %v956_v43 = vperm.slane %v2904_v28, 1 }
 0x1cb   :  { %v2877_v33 = vpop.permute.xlu1 %1165 }
 0x1cc   :  { %4033 = vst [vmem:[#allocation75_spill] sm:$0xff] %v2877_v33  ;;  %v988_v33 = vperm.slane %v2892_v35, 1 }
 0x1cd   :  { %1291 = vrot.lane.b32.xlu0 %v2266_v26, %s2099_s21  ;;  %724 = vrot.lane.b32.xlu2 %v2401_v11, %s2090_s15 }
 0x1ce   :  { %v996_v59 = vmul.f32 %v988_v33, %v982_v23 }
 0x1cf   :  { %v2888_v60 = vpop.permute.xlu0 %1037  ;;  %v2890_v34 = vpop.permute.xlu2 %909 }
 0x1d0   :  { %4034 = vst [vmem:[#allocation76_spill] sm:$0xff] %v2890_v34  ;;  %v1046_v31 = vsel %vm1043_vm7, %v2827_v47, %v2888_v60  ;;  %v918_v37 = vsel %vm915_vm11, %v2665_v36, %v2890_v34  ;;  %v2945_v34 = vld [vmem:[#allocation5 + $0x42] ss:$8 sm:$0xf] }
 0x1d1   :  { %v1060_v24 = vmul.f32 %v1052_v38, %v1046_v31  ;;  %v950_v38 = vsel %vm947_vm10, %v2653_v3, %v2873_v49  ;;  %v1051_v31 = vperm.slane %v2875_v1, 0  ;;  %v932_v15 = vmul.f32 %v924_v6, %v918_v37  ;;  %4036 = vst [vmem:[#allocation78_spill] sm:$0xff] %v2945_v34 }
 0x1d2   :  { %v964_v44 = vmul.f32 %v956_v43, %v950_v38  ;;  %v852_v43 = vperm.slane %v2945_v34, 0 }
 0x1d3   :  { %1650 = vmatpush.msrb.mxu3 %v1060_v24  ;;  %v2912_v12 = vpop.permute.xlu1 %1133  ;;  %v2926_v24 = vld [vmem:[#allocation5 + $0x41] ss:$8 sm:$0xf] }
 0x1d4   :  { %4035 = vst [vmem:[#allocation77_spill] sm:$0xff] %v2912_v12  ;;  %v769_v33 = vperm.slane %v2926_v24, 0 }
 0x1d5   :  { %1163 = vrot.lane.b32.xlu0 %v2266_v26, %s2101_s23  ;;  %1265 = vrot.lane.b32.xlu2 %v2413_v52, %s2095_s18 }
 0x1d6   :  { %1651 = vmatpush.msrb.mxu3 %v1028_v62  ;;  %v743_v62 = vsel %vm734_vm12, %v2592_v27, %v2696_v13 }
 0x1d7   :  { %v1042_v12 = vpop.permute.xlu0 %1041  ;;  %v2935_v2 = vpop.permute.xlu2 %876  ;;  %v777_v20 = vadd.f32 %v769_v33, %v743_v62 }
 0x1d8   :  { %v1047_v32 = vsel %vm1043_vm7, %v1042_v12, %v2827_v47  ;;  %1652 = vmatpush.msrb.mxu3 %v996_v59 }
 0x1d9   :  { %v1059_v23 = vmul.f32 %v1051_v31, %v1047_v32  ;;  %v781_v59 = vmax.f32 %v2541_v58, %v777_v20 }
 0x1da   :  { %1653 = vmatpush.msrb.mxu3 %v964_v44  ;;  %v1019_v44 = vperm.slane %v2885_v50, 0 }
 0x1db   :  { %1572 = vmatpush.msrb.mxu0 %v1059_v23  ;;  %v2947_v21 = vpop.permute.xlu1 %1135 }
 0x1dc   :  { %1654 = vmatpush.msrb.mxu3 %v932_v15 }
 0x1dd   :  { %1131 = vrot.lane.b32.xlu0 %v2266_v26, %s2102_s24  ;;  %1167 = vrot.lane.b32.xlu2 %v2401_v11, %s2101_s23 }
 0x1df   :  { %v2956_v37 = vpop.permute.xlu0 %1009  ;;  %v2958_v32 = vpop.permute.xlu2 %797 }
 0x1e0   :  { %4037 = vst [vmem:[#allocation79_spill] sm:$0xff] %v2956_v37  ;;  %v1015_v15 = vsel %vm1011_vm8, %v2956_v37, %v2610_v53  ;;  %v826_v47 = vsel %vm817_vm13, %v2958_v32, %v2739_v46  ;;  %v987_v53 = vperm.slane %v2892_v35, 0  ;;  %v958_v37 = vperm.slane %v2904_v28, 3 }
 0x1e1   :  { %4038 = vst [vmem:[#allocation80_spill] sm:$0xff] %v2958_v32  ;;  %v860_v38 = vadd.f32 %v852_v43, %v826_v47  ;;  %v1027_v31 = vmul.f32 %v1019_v44, %v1015_v15  ;;  %v1053_v43 = vperm.slane %v2875_v1, 2  ;;  %v1054_v44 = vperm.slane %v2875_v1, 3  ;;  %v2986_v15 = vld [vmem:[#allocation3 + $0x45] ss:$8 sm:$0xf] }
 0x1e2   :  { %v955_v1 = vperm.slane %v2904_v28, 0 }
 0x1e3   :  { %1573 = vmatpush.msrb.mxu0 %v1027_v31  ;;  %v2969_v6 = vpop.permute.xlu1 %730  ;;  %v864_v33 = vmax.f32 %v781_v59, %v860_v38 }
 0x1e5   :  { %1233 = vrot.lane.b32.xlu0 %v2413_v52, %s2096_s5  ;;  %1201 = vrot.lane.b32.xlu2 %v2413_v52, %s2097_s19 }
 0x1e6   :  { %1636 = vmatpush.msrb.mxu2 %v864_v33 }
 0x1e7   :  { %v2976_v23 = vpop.permute.xlu0 %977  ;;  %v2978_v62 = vpop.permute.xlu2 %805 }
 0x1e8   :  { %4039 = vst [vmem:[#allocation81_spill] sm:$0xff] %v2976_v23  ;;  %v983_v20 = vsel %vm979_vm9, %v2976_v23, %v2625_v61 }
 0x1e9   :  { %v995_v58 = vmul.f32 %v987_v53, %v983_v20 }
 0x1eb   :  { %1574 = vmatpush.msrb.mxu0 %v995_v58  ;;  %v1040_v47 = vpop.permute.xlu1 %1039  ;;  %v923_v58 = vperm.slane %v2924_v48, 0 }
 0x1ec   :  { %v1044_v38 = vsel %vm1043_vm7, %v1040_v47, %v1042_v12  ;;  %v1045_v31 = vsel %vm1043_vm7, %v2888_v60, %v1040_v47  ;;  %v1275_v12 = vperm.slane %v2986_v15, 0  ;;  %vm3958_vm7 = vcmp.lt.s32.totalorder %v2282_v30, 94 }
 0x1ed   :  { %v2994_v59 = vmul.f32 %v1053_v43, %v1045_v31  ;;  %v2996_v61 = vmul.f32 %v1054_v44, %v1044_v38  ;;  %813 = vrot.lane.b32.xlu0 %v2413_v52, %s2094_s1  ;;  %1099 = vrot.lane.b32.xlu2 %v2266_v26, %s2104_s26  ;;  %v919_v43 = vsel %vm915_vm11, %v2708_v54, %v2665_v36  ;;  %v889_v38 = vld [vmem:[#allocation3] ss:$8 sm:$0xf]  ;;  %v957_v54 = vperm.slane %v2904_v28, 2 }
 0x1ee   :  { %v891_v28 = vperm.slane %v889_v38, 0 }
 0x1ef   :  { %4040 = vst [vmem:[#allocation82_spill] sm:$0xff] %v2996_v61  ;;  %v946_v33 = vpop.permute.xlu0 %945  ;;  %v1262_v53 = vpop.permute.xlu2 %1261  ;;  %v931_v61 = vmul.f32 %v923_v58, %v919_v43 }
 0x1f0   :  { %v951_v60 = vsel %vm947_vm10, %v946_v33, %v2653_v3  ;;  %v1270_v20 = vsel %vm1267_vm14, %v2749_v56, %v1262_v53  ;;  %v892_v3 = vperm.slane %v889_v38, 1 }
 0x1f1   :  { %v963_v44 = vmul.f32 %v955_v1, %v951_v60  ;;  %v1283_v47 = vmul.f32 %v1275_v12, %v1270_v20  ;;  %v3027_v60 = vld [vmem:[#allocation3 + $0x42] ss:$8 sm:$0xf] }
 0x1f2   :  { %v3930_v58 = vperm.slane %v3027_v60, 1 }
 0x1f3   :  { %1575 = vmatpush.msrb.mxu0 %v963_v44  ;;  %1598 = vmatpush.msrb.mxu1 %v1283_v47  ;;  %v3015_v31 = vpop.permute.xlu1 %1101 }
 0x1f5   :  { %1105 = vrot.lane.b32.xlu0 %v2413_v52, %s2104_s26  ;;  %1067 = vrot.lane.b32.xlu2 %v2266_v26, %s2105_s27 }
 0x1f6   :  { %1576 = vmatpush.msrb.mxu0 %v931_v61  ;;  %v1276_v61 = vperm.slane %v2986_v15, 1 }
 0x1f7   :  { %v879_v23 = vpop.permute.xlu0 %878  ;;  %v3022_v36 = vpop.permute.xlu2 %793 }
 0x1f8   :  { %v887_v1 = vsel %vm884_vm15, %v2935_v2, %v879_v23 }
 0x1f9   :  { %v900_v12 = vmul.f32 %v892_v3, %v887_v1 }
 0x1fb   :  { %1655 = vmatpush.msrb.mxu3 %v900_v12  ;;  %v3029_v20 = vpop.permute.xlu1 %1069 }
 0x1fd   :  { %1073 = vrot.lane.b32.xlu0 %v2413_v52, %s2105_s27  ;;  %1169 = vrot.lane.b32.xlu2 %v2413_v52, %s2101_s23 }
 0x1ff   :  { %v800_v43 = vpop.permute.xlu0 %799  ;;  %v3037_v44 = vpop.permute.xlu2 %1263 }
 0x200   :  { %v821_v47 = vsel %vm817_vm13, %v800_v43, %v2978_v62  ;;  %v1269_v3 = vsel %vm1267_vm14, %v1262_v53, %v3037_v44 }
 0x201   :  { %v3045_v1 = vmul.f32 %v1276_v61, %v1269_v3  ;;  %v842_v12 = vmul.f32 %v3930_v58, %v821_v47  ;;  %v3073_v3 = vld [vmem:[#allocation3 + $0x41] ss:$8 sm:$0xf] }
 0x203   :  { %1656 = vmatpush.msrb.mxu3 %v842_v12  ;;  %v944_v46 = vpop.permute.xlu1 %943 }
 0x204   :  { %v948_v13 = vsel %vm947_vm10, %v944_v46, %v946_v33  ;;  %v949_v32 = vsel %vm947_vm10, %v2873_v49, %v944_v46  ;;  %v3931_v49 = vperm.slane %v3027_v60, 0  ;;  %v824_v46 = vsel %vm817_vm13, %v3022_v36, %v800_v43  ;;  %v3090_v43 = vld [vmem:[#allocation3 + $0x25] ss:$8 sm:$0xf] }
 0x205   :  { %v3056_v34 = vmul.f32 %v957_v54, %v949_v32  ;;  %v3058_v53 = vmul.f32 %v958_v37, %v948_v13  ;;  %1007 = vrot.lane.b32.xlu0 %v2401_v11, %s2091_s2  ;;  %1137 = vrot.lane.b32.xlu2 %v2413_v52, %s2102_s24  ;;  %v893_v54 = vperm.slane %v889_v38, 2  ;;  %v894_v37 = vperm.slane %v889_v38, 3 }
 0x206   :  { %v3932_v38 = vperm.slane %v3073_v3, 1  ;;  %vm3949_vm10 = vcmp.lt.s32.totalorder %v2282_v30, 95 }
 0x207   :  { %4041 = vst [vmem:[#allocation83_spill] sm:$0xff] %v3056_v34  ;;  %v883_v61 = vpop.permute.xlu0 %882  ;;  %v3064_v47 = vpop.permute.xlu2 %1231 }
 0x208   :  { %4042 = vst [vmem:[#allocation84_spill] sm:$0xff] %v3058_v53  ;;  %v888_v33 = vsel %vm884_vm15, %v883_v61, %v2935_v2  ;;  %v841_v2 = vmul.f32 %v3931_v49, %v824_v46 }
 0x209   :  { %v899_v13 = vmul.f32 %v891_v28, %v888_v33 }
 0x20b   :  { %1577 = vmatpush.msrb.mxu0 %v899_v13  ;;  %v881_v32 = vpop.permute.xlu1 %880  ;;  %v3941_v13 = vperm.slane %v2785_v42, 0 }
 0x20c   :  { %v885_v12 = vsel %vm884_vm15, %v881_v32, %v883_v61  ;;  %v886_v58 = vsel %vm884_vm15, %v879_v23, %v881_v32  ;;  %v3933_v61 = vperm.slane %v3073_v3, 0  ;;  %v3935_v32 = vperm.slane %v3027_v60, 2 }
 0x20d   :  { %v3081_v53 = vmul.f32 %v893_v54, %v886_v58  ;;  %v3083_v34 = vmul.f32 %v894_v37, %v885_v12  ;;  %975 = vrot.lane.b32.xlu0 %v2401_v11, %s2092_s16  ;;  %911 = vrot.lane.b32.xlu2 %v2401_v11, %s2093_s17  ;;  %v3934_v12 = vperm.slane %v3027_v60, 3  ;;  %v3115_v58 = vld [vmem:[#allocation3 + $0x23] ss:$8 sm:$0xf]  ;;  %v675_v49 = vmul.f32 %v3941_v13, %v2765_v7 }
 0x20e   :  { %1578 = vmatpush.msrb.mxu0 %v841_v2  ;;  %vm1562_vm15 = vcmask 261120  }
 0x20f   :  { %4043 = vst [vmem:[#allocation85_spill] sm:$0xff] %v3083_v34  ;;  %v717_v28 = vpop.permute.xlu0 %716  ;;  %v3092_v23 = vpop.permute.xlu2 %795 }
 0x210   :  { %v738_v33 = vsel %vm734_vm12, %v717_v28, %v2769_v63  ;;  %v741_v46 = vsel %vm734_vm12, %v2817_v9, %v717_v28  ;;  %v575_v28 = vsel %vm3962_vm5, %v2517_v25, %v2527_v51 }
 0x211   :  { %v758_v54 = vmul.f32 %v3933_v61, %v741_v46  ;;  %v759_v37 = vmul.f32 %v3932_v38, %v738_v33  ;;  %v572_v33 = vsel %vm3962_vm5, %v2527_v51, %v2704_v14  ;;  %v3121_v38 = vld [vmem:[#allocation3 + $0x44] ss:$8 sm:$0xf]  ;;  %v4045_v51 = vperm.slane %v2785_v42, 1 }
 0x212   :  { %4044 = vst [vmem:[#allocation86_spill] sm:$0xff] %v3121_v38  ;;  %v1243_v7 = vperm.slane %v3121_v38, 0 }
 0x213   :  { %1579 = vmatpush.msrb.mxu0 %v758_v54  ;;  %1657 = vmatpush.msrb.mxu3 %v759_v37  ;;  %v812_v46 = vpop.permute.xlu1 %811  ;;  %v676_v14 = vmul.f32 %v4045_v51, %v2779_v4  ;;  %v3940_v4 = vperm.slane %v3115_v58, 1  ;;  %v3939_v51 = vperm.slane %v3115_v58, 0 }
 0x214   :  { %v818_v61 = vsel %vm817_vm13, %v2978_v62, %v812_v46  ;;  %v827_v2 = vsel %vm817_vm13, %v812_v46, %v3022_v36  ;;  %v3146_v62 = vld [vmem:[%s3873_s0 + $0x10] sm:$0xff]  ;;  %v4048_v36 = vperm.slane %v3090_v43, 0 }
 0x215   :  { %v3137_v54 = vmul.f32 %v3935_v32, %v818_v61  ;;  %v3141_v37 = vmul.f32 %v3934_v12, %v827_v2  ;;  %4047 = vst [vmem:[#allocation88_spill] sm:$0xff] %v3146_v62  ;;  %726 = vrot.lane.b32.xlu0 %v3146_v62, %s2090_s15  ;;  %1103 = vrot.lane.b32.xlu2 %v2401_v11, %s2104_s26  ;;  %v4049_v2 = vperm.slane %v3090_v43, 1 }
 0x216   :  { %1580 = vmatpush.msrb.mxu0 %v675_v49  ;;  %1658 = vmatpush.msrb.mxu3 %v676_v14  ;;  %v592_v61 = vmul.f32 %v4048_v36, %v575_v28  ;;  %v484_v12 = vsel %vm477_vm4, %v2488_v29, %v2501_v39  ;;  %v487_v32 = vsel %vm477_vm4, %v2673_v41, %v2488_v29 }
 0x217   :  { %4046 = vst [vmem:[#allocation87_spill] sm:$0xff] %v3141_v37  ;;  %v593_v46 = vmul.f32 %v4049_v2, %v572_v33  ;;  %v3168_v49 = vpop.permute.xlu0 %1227  ;;  %v3170_v28 = vpop.permute.xlu2 %1323  ;;  %v3938_v33 = vperm.slane %v2714_v18, 1  ;;  %v404_v29 = vsel %vm394_vm3, %v2631_v0, %v2464_v17  ;;  %v401_v36 = vsel %vm394_vm3, %v2464_v17, %v2476_v22  ;;  %v3201_v17 = vld [vmem:[#allocation3 + $0x43] ss:$8 sm:$0xf] }
 0x218   :  { %4050 = vst [vmem:[#allocation89_spill] sm:$0xff] %v3170_v28  ;;  %v1238_v14 = vsel %vm1235_vm0, %v3168_v49, %v2783_v10  ;;  %1581 = vmatpush.msrb.mxu0 %v592_v61  ;;  %v501_v2 = vmul.f32 %v3939_v51, %v487_v32  ;;  %v502_v61 = vmul.f32 %v3940_v4, %v484_v12  ;;  %v4052_v32 = vperm.slane %v2714_v18, 0  ;;  %v4063_v51 = vld [vmem:[#allocation69_spill] sm:$0xff]  ;;  %v4064_v4 = vld [vmem:[#allocation74_spill] sm:$0xff] }
 0x219   :  { %1659 = vmatpush.msrb.mxu3 %v593_v46  ;;  %v1251_v41 = vmul.f32 %v1243_v7, %v1238_v14  ;;  %v3936_v46 = vperm.slane %v2671_v40, 1  ;;  %v321_v0 = vsel %vm311_vm1, %v2600_v45, %v2441_v5  ;;  %4051 = vst [vmem:[#allocation90_spill] sm:$0xff] %v3201_v17  ;;  %v419_v7 = vmul.f32 %v3938_v33, %v401_v36  ;;  %v4053_v45 = vld [vmem:[#allocation15_spill] sm:$0xff]  ;;  %v4096_v22 = vld [vmem:[#allocation21_spill] sm:$0xff] }
 0x21a   :  { %1582 = vmatpush.msrb.mxu0 %v2252_v19  ;;  %v318_v19 = vsel %vm311_vm1, %v2441_v5, %v2449_v8  ;;  %v418_v12 = vmul.f32 %v4052_v32, %v404_v29  ;;  %v235_v14 = vsel %vm228_vm2, %v4053_v45, %v2425_v57  ;;  %v1211_v5 = vperm.slane %v3201_v17, 0  ;;  %v3288_v37 = vld [vmem:[#allocation3 + $0x47] ss:$8 sm:$0xf] }
 0x21b   :  { %1660 = vmatpush.msrb.mxu3 %v2246_v16  ;;  %1599 = vmatpush.msrb.mxu1 %v1251_v41  ;;  %v3937_v16 = vperm.slane %v2532_v55, 1  ;;  %v4054_v29 = vperm.slane %v2671_v40, 0  ;;  %v336_v36 = vmul.f32 %v3936_v46, %v318_v19  ;;  %v3236_v46 = vld [vmem:[#allocation3 + $0x60] ss:$8 sm:$0xf]  ;;  %v742_v13 = vsel %vm734_vm12, %v4064_v4, %v4063_v51 }
 0x21c   :  { %1583 = vmatpush.msrb.mxu0 %v501_v2  ;;  %v4074_v4 = vld [vmem:[#allocation66_spill] sm:$0xff]  ;;  %v4087_v8 = vld [vmem:[#allocation27_spill] sm:$0xff] }
 0x21d   :  { %1661 = vmatpush.msrb.mxu3 %v502_v61  ;;  %809 = vrot.lane.b32.xlu0 %v3146_v62, %s2094_s1  ;;  %v335_v41 = vmul.f32 %v4054_v29, %v321_v0  ;;  %v4055_v61 = vld [vmem:[#allocation62_spill] sm:$0xff]  ;;  %v253_v19 = vmul.f32 %v3937_v16, %v235_v14  ;;  %v3234_v29 = vld [vmem:[#allocation7] sm:$0xff]  ;;  %v4059_v14 = vld [vmem:[#allocation12_spill] sm:$0xff] }
 0x21e   :  { %1071 = vrot.lane.b32.xlu2 %v2401_v11, %s2105_s27  ;;  %1584 = vmatpush.msrb.mxu0 %v418_v12  ;;  %v4056_v12 = vld [vmem:[#allocation28_spill] sm:$0xff]  ;;  %4058 = vst [vmem:[#allocation15_spill] sm:$0xff] %v3234_v29  ;;  %v1205_v9 = vsel %vm1203_vm6, %v4055_v61, %v4074_v4 }
 0x21f   :  { %1662 = vmatpush.msrb.mxu3 %v419_v7  ;;  %v3221_v2 = vpop.permute.xlu0 %1195  ;;  %v3223_v57 = vpop.permute.xlu2 %807  ;;  %v4057_v7 = vperm.slane %v2532_v55, 0 }
 0x220   :  { %v1206_v32 = vsel %vm1203_vm6, %v3221_v2, %v4055_v61  ;;  %1585 = vmatpush.msrb.mxu0 %v335_v41  ;;  %v1992_v41 = vld [vmem:[%s3873_s0 + $0x8] sm:$0xff] }
 0x221   :  { %1663 = vmatpush.msrb.mxu3 %v336_v36  ;;  %v252_v0 = vmul.f32 %v4057_v7, %v4056_v12  ;;  %v1219_v45 = vmul.f32 %v1211_v5, %v1206_v32  ;;  %v1993_v36 = vld [vmem:[%s3873_s0] sm:$0xff]  ;;  %v1371_v5 = vperm.slane %v3236_v46, 0  ;;  %v4061_v7 = vld [vmem:[#allocation64_spill] sm:$0xff] }
 0x223   :  { %1586 = vmatpush.msrb.mxu0 %v252_v0  ;;  %1664 = vmatpush.msrb.mxu3 %v253_v19 }
 0x224   :  { %1600 = vmatpush.msrb.mxu1 %v1219_v45  ;;  %v3265_v45 = vld [vmem:[%s3873_s0 + $0x18] sm:$0xff] }
 0x225   :  { %1665 = vmatpush.msrb.mxu3 %v1992_v41  ;;  %1587 = vmatpush.msrb.mxu0 %v1993_v36  ;;  %4062 = vst [vmem:[#allocation28_spill] sm:$0xff] %v3265_v45  ;;  %v1277_v41 = vperm.slane %v2986_v15, 2  ;;  %v1278_v36 = vperm.slane %v2986_v15, 3 }
 0x226   :  { %728 = vrot.lane.b32.xlu0 %v4059_v14, %s2090_s15  ;;  %1327 = vrot.lane.b32.xlu2 %v2401_v11, %s2106_s10  ;;  %v4066_v14 = vperm.slane %v3027_v60, 0 }
 0x227   :  { %1666 = vmatmul.f32.vlgmr.msrb.gmra.mxu3 %v3234_v29  ;;  %1588 = vmatmul.f32.vlgmr.msrb.gmra.mxu0 %v3234_v29  ;;  %v3252_v32 = vpop.permute.xlu0 %1355  ;;  %v3254_v12 = vpop.permute.xlu2 %724 }
 0x228   :  { %4060 = vst [vmem:[#allocation62_spill] sm:$0xff] %v3252_v32  ;;  %v1366_v0 = vsel %vm3958_vm7, %v3252_v32, %v4061_v7  ;;  %v739_v61 = vsel %vm734_vm12, %v4063_v51, %v3254_v12  ;;  %v4077_v51 = vperm.slane %v3073_v3, 1  ;;  %vm1107_vm7 = vcmp.lt.s32.totalorder %v2282_v30, 2 }
 0x229   :  { %v1379_v19 = vmul.f32 %v1371_v5, %v1366_v0 }
 0x22b   :  { %1637 = vmatpush.msrb.mxu2 %v1379_v19 }
 0x22e   :  { %1295 = vrot.lane.b32.xlu0 %v2401_v11, %s2099_s21  ;;  %815 = vrot.lane.b32.xlu2 %v3265_v45, %s2094_s1 }
 0x22f   :  { %v802_v16 = vpop.permute.xlu0 %801  ;;  %v1266_v33 = vpop.permute.xlu2 %1265 }
 0x230   :  { %v825_v5 = vsel %vm817_vm13, %v3092_v23, %v802_v16  ;;  %v1268_v0 = vsel %vm1267_vm14, %v3037_v44, %v1266_v33  ;;  %v1271_v19 = vsel %vm1267_vm14, %v1266_v33, %v2749_v56  ;;  %v4067_v44 = vperm.slane %v3073_v3, 0  ;;  %v4068_v33 = vld [vmem:[#allocation65_spill] sm:$0xff] }
 0x231   :  { %v1285_v15 = vmul.f32 %v1277_v41, %v1268_v0  ;;  %v3284_v45 = vmul.f32 %v1278_v36, %v1271_v19  ;;  %v845_v25 = vmul.f32 %v4066_v14, %v825_v5  ;;  %v1339_v56 = vperm.slane %v3288_v37, 0  ;;  %v3312_v0 = vld [vmem:[#allocation3 + $0x46] ss:$8 sm:$0xf] }
 0x232   :  { %v762_v34 = vmul.f32 %v4067_v44, %v742_v13  ;;  %v4069_v41 = vperm.slane %v2785_v42, 0  ;;  %vm3948_vm14 = vcmp.lt.s32.totalorder %v2282_v30, 96  ;;  %v1307_v19 = vperm.slane %v3312_v0, 0 }
 0x233   :  { %4065 = vst [vmem:[#allocation64_spill] sm:$0xff] %v3284_v45  ;;  %1601 = vmatpush.msrb.mxu1 %v845_v25  ;;  %1754 = vmatpush.msra.mxu3 %v1285_v15 }
 0x234   :  { %v679_v14 = vmul.f32 %v4069_v41, %v4068_v33  ;;  %v1244_v33 = vperm.slane %v3121_v38, 1  ;;  %v4071_v41 = vld [vmem:[#allocation73_spill] sm:$0xff] }
 0x235   :  { %1602 = vmatpush.msrb.mxu1 %v762_v34  ;;  %v1544_v34 = vld [vmem:[%s3879_s6] sm:$0xff] }
 0x236   :  { %1361 = vrot.lane.b32.xlu0 %v2413_v52, %s2098_s20  ;;  %1297 = vrot.lane.b32.xlu2 %v2413_v52, %s2099_s21  ;;  %v3336_v52 = vld [vmem:[#allocation7 + $0x10] sm:$0xff] }
 0x237   :  { %v3301_v25 = vpop.permute.xlu0 %1325  ;;  %v3303_v36 = vpop.permute.xlu2 %1167  ;;  %1603 = vmatpush.msrb.mxu1 %v679_v14  ;;  %4073 = vst [vmem:[#allocation91_spill] sm:$0xff] %v3336_v52 }
 0x238   :  { %v1334_v13 = vsel %vm3949_vm10, %v3170_v28, %v3301_v25  ;;  %vm1139_vm10 = vcmp.lt.s32.totalorder %v2282_v30, 126 }
 0x239   :  { %v1347_v5 = vmul.f32 %v1339_v56, %v1334_v13  ;;  %v1237_v13 = vsel %vm1235_vm0, %v2783_v10, %v3064_v47  ;;  %v822_v10 = vsel %vm817_vm13, %v802_v16, %v3223_v57 }
 0x23a   :  { %v1252_v45 = vmul.f32 %v1244_v33, %v1237_v13  ;;  %v4075_v13 = vperm.slane %v3027_v60, 1 }
 0x23b   :  { %1638 = vmatpush.msrb.mxu2 %v1347_v5 }
 0x23c   :  { %v846_v16 = vmul.f32 %v4075_v13, %v822_v10  ;;  %v4080_v13 = vperm.slane %v2785_v42, 1 }
 0x23e   :  { %1549 = vperm.xlu0 %1988, %v1544_v34   ;;  %v1212_v34 = vperm.slane %v3201_v17, 1 }
 0x23f   :  { %v3316_v15 = vpop.permute.xlu0 %1291  ;;  %v3318_v44 = vpop.permute.xlu2 %1201 }
 0x240   :  { %4070 = vst [vmem:[#allocation69_spill] sm:$0xff] %v3316_v15  ;;  %v1302_v56 = vsel %vm3948_vm14, %v3316_v15, %v4071_v41  ;;  %v3329_v14 = vsel %vm1203_vm6, %v3318_v44, %v3221_v2  ;;  %v3342_v2 = vld [vmem:[#allocation3 + $0x27] ss:$8 sm:$0xf]  ;;  %vm1171_vm14 = vcmp.lt.s32.totalorder %v2282_v30, 114 }
 0x241   :  { %4072 = vst [vmem:[#allocation65_spill] sm:$0xff] %v3329_v14  ;;  %v1315_v5 = vmul.f32 %v1307_v19, %v1302_v56  ;;  %v1179_v19 = vperm.slane %v3342_v2, 0  ;;  %v1220_v56 = vmul.f32 %v1212_v34, %v1205_v9  ;;  %v3363_v9 = vld [vmem:[#allocation3 + $0x26] ss:$8 sm:$0xf]  ;;  %v763_v34 = vmul.f32 %v4077_v51, %v739_v61 }
 0x242   :  { %v1180_v29 = vperm.slane %v3342_v2, 1  ;;  %v3369_v15 = vld [vmem:[#allocation7 + $0x28] sm:$0xff]  ;;  %v4081_v61 = vld [vmem:[#allocation77_spill] sm:$0xff]  ;;  %v1147_v51 = vperm.slane %v3363_v9, 0  ;;  %v4095_v41 = vld [vmem:[#allocation23_spill] sm:$0xff] }
 0x243   :  { %1639 = vmatpush.msrb.mxu2 %v1315_v5  ;;  %v4076_v5 = vld [vmem:[#allocation75_spill] sm:$0xff]  ;;  %4078 = vst [vmem:[#allocation66_spill] sm:$0xff] %v3369_v15 }
 0x244   :  { %1923 = vmatmul.msk.f32.vlgmr.msrb.gmra.mxu2 %vm1562_vm15, %v3336_v52  ;;  %v1173_v10 = vsel %vm1171_vm14, %v4076_v5, %v3303_v36  ;;  %v3407_v52 = vld [vmem:[#allocation7 + $0x40] sm:$0xf] }
 0x245   :  { %1676 = vmatpush.msra.mxu2 %v3045_v1  ;;  %v1188_v62 = vmul.f32 %v1180_v29, %v1173_v10  ;;  %v3402_v10 = vld [vmem:[#allocation3 + $0x22] ss:$8 sm:$0xf]  ;;  %4086 = vst [vmem:[#allocation75_spill] sm:$0xff] %v3407_v52 }
 0x247   :  { %1677 = vmatpush.msra.mxu2 %v1252_v45  ;;  %v1164_v33 = vpop.permute.xlu0 %1163  ;;  %v3356_v1 = vpop.permute.xlu2 %1099 }
 0x248   :  { %v1174_v14 = vsel %vm1171_vm14, %v1164_v33, %v4076_v5  ;;  %v4082_v5 = vld [vmem:[#allocation57_spill] sm:$0xff] }
 0x249   :  { %1678 = vmatpush.msra.mxu2 %v1220_v56  ;;  %v1187_v45 = vmul.f32 %v1179_v19, %v1174_v14  ;;  %v4079_v56 = vld [vmem:[#allocation68_spill] sm:$0xff]  ;;  %v1148_v19 = vperm.slane %v3363_v9, 1 }
 0x24a   :  { %v680_v14 = vmul.f32 %v4080_v13, %v4079_v56  ;;  %v4084_v13 = vld [vmem:[#allocation32_spill] sm:$0xff] }
 0x24b   :  { %1679 = vmatpush.msra.mxu2 %v846_v16  ;;  %1604 = vmatpush.msrb.mxu1 %v1187_v45  ;;  %v1141_v16 = vsel %vm1139_vm10, %v4081_v61, %v2947_v21  ;;  %v4083_v45 = vld [vmem:[#allocation34_spill] sm:$0xff] }
 0x24c   :  { %1924 = vmatmul.msk.f32.gmra.mxu2 %vm1562_vm15, %v3369_v15  ;;  %v573_v42 = vsel %vm3962_vm5, %v4083_v45, %v4082_v5  ;;  %v576_v28 = vsel %vm3962_vm5, %v4084_v13, %v4083_v45  ;;  %v1156_v32 = vmul.f32 %v1148_v19, %v1141_v16  ;;  %v4085_v5 = vperm.slane %v3090_v43, 1  ;;  %v4088_v45 = vld [vmem:[#allocation24_spill] sm:$0xff] }
 0x24d   :  { %1680 = vmatpush.msra.mxu2 %v763_v34  ;;  %v485_v19 = vsel %vm477_vm4, %v4088_v45, %v4087_v8  ;;  %v3413_v16 = vld [vmem:[#allocation3 + $0x21] ss:$8 sm:$0xf]  ;;  %vm1075_vm5 = vcmp.lt.s32.totalorder %v2282_v30, 14 }
 0x24e   :  { %v597_v15 = vmul.f32 %v4085_v5, %v573_v42  ;;  %v4091_v5 = vperm.slane %v3115_v58, 1 }
 0x24f   :  { %1681 = vmatpush.msra.mxu2 %v680_v14  ;;  %v3390_v56 = vpop.permute.xlu0 %1131  ;;  %v3392_v34 = vpop.permute.xlu2 %1067 }
 0x250   :  { %v1142_v29 = vsel %vm1139_vm10, %v3390_v56, %v4081_v61  ;;  %v1078_v13 = vsel %vm1075_vm5, %v3392_v34, %v3029_v20 }
 0x251   :  { %1682 = vmatpush.msra.mxu2 %v1188_v62  ;;  %v1155_v14 = vmul.f32 %v1147_v51, %v1142_v29  ;;  %v4089_v62 = vperm.slane %v3090_v43, 0  ;;  %v4090_v51 = vld [vmem:[#allocation55_spill] sm:$0xff]  ;;  %v1110_v29 = vsel %vm1107_vm7, %v3356_v1, %v3015_v31 }
 0x252   :  { %v488_v42 = vsel %vm477_vm4, %v4090_v51, %v4088_v45  ;;  %v506_v45 = vmul.f32 %v4091_v5, %v485_v19  ;;  %v4092_v51 = vld [vmem:[#allocation10_spill] sm:$0xff]  ;;  %v4093_v19 = vperm.slane %v3115_v58, 0 }
 0x253   :  { %1683 = vmatpush.msra.mxu2 %v1156_v32  ;;  %1605 = vmatpush.msrb.mxu1 %v1155_v14  ;;  %v596_v61 = vmul.f32 %v4089_v62, %v576_v28  ;;  %v1116_v32 = vperm.slane %v3402_v10, 1  ;;  %v1245_v14 = vperm.slane %v3121_v38, 2  ;;  %v1182_v28 = vperm.slane %v3342_v2, 3 }
 0x254   :  { %1925 = vmatmul.msk.f32.gmra.mxu2 %vm1562_vm15, %v3407_v52  ;;  %v1084_v62 = vperm.slane %v3413_v16, 1  ;;  %v505_v5 = vmul.f32 %v4093_v19, %v488_v42  ;;  %v4098_v19 = vld [vmem:[#allocation19_spill] sm:$0xff] }
 0x255   :  { %1684 = vmatpush.msra.mxu2 %v597_v15  ;;  %1606 = vmatpush.msrb.mxu1 %v596_v61  ;;  %v1213_v15 = vperm.slane %v3201_v17, 2  ;;  %v1204_v61 = vsel %vm1203_vm6, %v4074_v4, %v3318_v44 }
 0x257   :  { %1685 = vmatpush.msra.mxu2 %v4092_v51  ;;  %v1234_v52 = vpop.permute.xlu0 %1233  ;;  %v1170_v38 = vpop.permute.xlu2 %1169  ;;  %1607 = vmatpush.msrb.mxu1 %v2266_v26  ;;  %v1124_v51 = vmul.f32 %v1116_v32, %v1110_v29  ;;  %v402_v26 = vsel %vm394_vm3, %v4096_v22, %v4095_v41  ;;  %v1092_v29 = vmul.f32 %v1084_v62, %v1078_v13  ;;  %v4101_v22 = vperm.slane %v2714_v18, 1 }
 0x258   :  { %v1236_v17 = vsel %vm1235_vm0, %v3064_v47, %v1234_v52  ;;  %v3453_v4 = vsel %vm1235_vm0, %v1234_v52, %v3168_v49  ;;  %v1175_v44 = vsel %vm1171_vm14, %v1170_v38, %v1164_v33  ;;  %v4097_v47 = vld [vmem:[#allocation20_spill] sm:$0xff]  ;;  %v1221_v49 = vmul.f32 %v1213_v15, %v1204_v61 }
 0x259   :  { %4094 = vst [vmem:[#allocation68_spill] sm:$0xff] %v3453_v4  ;;  %1686 = vmatpush.msra.mxu2 %v506_v45  ;;  %v1253_v42 = vmul.f32 %v1245_v14, %v1236_v17  ;;  %v3461_v32 = vmul.f32 %v1182_v28, %v1175_v44  ;;  %1608 = vmatpush.msrb.mxu1 %v505_v5  ;;  %v4099_v33 = vld [vmem:[#allocation16_spill] sm:$0xff]  ;;  %v4100_v45 = vld [vmem:[#allocation18_spill] sm:$0xff]  ;;  %v4102_v13 = vperm.slane %v2671_v40, 1  ;;  %v4103_v28 = vperm.slane %v2532_v55, 1 }
 0x25a   :  { %v319_v52 = vsel %vm311_vm1, %v4098_v19, %v4097_v47  ;;  %v236_v4 = vsel %vm228_vm2, %v4100_v45, %v4099_v33  ;;  %v423_v17 = vmul.f32 %v4101_v22, %v402_v26  ;;  %v752_v15 = vperm.slane %v3073_v3, 2 }
 0x25b   :  { %1687 = vmatpush.msra.mxu2 %v1124_v51  ;;  %1755 = vmatpush.msra.mxu3 %v1253_v42  ;;  %v340_v14 = vmul.f32 %v4102_v13, %v319_v52  ;;  %v257_v62 = vmul.f32 %v4103_v28, %v236_v4  ;;  %v736_v51 = vsel %vm734_vm12, %v3254_v12, %v2969_v6  ;;  %v3493_v4 = vld [vmem:[#allocation7 + $0x8] sm:$0xff]  ;;  %v4104_v44 = vperm.slane %v3027_v60, 2 }
 0x25c   :  { %v4105_v12 = vperm.slane %v3027_v60, 3  ;;  %v1115_v60 = vperm.slane %v3402_v10, 0  ;;  %v495_v28 = vperm.slane %v3115_v58, 2  ;;  %vm4126_vm2 = vcmp.lt.s32.totalorder %v2282_v30, 94 }
 0x25d   :  { %1688 = vmatpush.msra.mxu2 %v1092_v29  ;;  %1756 = vmatpush.msra.mxu3 %v1221_v49  ;;  %v1149_v29 = vperm.slane %v3363_v9, 2  ;;  %vm4168_vm0 = vcmp.lt.s32.totalorder %v2282_v30, 127 }
 0x25f   :  { %1689 = vmatpush.msra.mxu2 %v423_v17  ;;  %v814_v61 = vpop.permute.xlu0 %813  ;;  %v1138_v5 = vpop.permute.xlu2 %1137  ;;  %v4107_v17 = vld [vmem:[#allocation59_spill] sm:$0xff] }
 0x260   :  { %v819_v18 = vsel %vm817_vm13, %v3223_v57, %v814_v61  ;;  %v828_v40 = vsel %vm817_vm13, %v814_v61, %v3092_v23  ;;  %v3491_v55 = vsel %vm1139_vm10, %v1138_v5, %v3390_v56  ;;  %v764_v57 = vmul.f32 %v752_v15, %v736_v51 }
 0x261   :  { %1690 = vmatpush.msra.mxu2 %v340_v14  ;;  %v847_v26 = vmul.f32 %v4104_v44, %v819_v18  ;;  %v3499_v42 = vmul.f32 %v4105_v12, %v828_v40  ;;  %v1181_v23 = vperm.slane %v3342_v2, 2  ;;  %v1172_v56 = vsel %vm1171_vm14, %v3303_v36, %v1170_v38  ;;  %v4106_v2 = vld [vmem:[#allocation71_spill] sm:$0xff] }
 0x262   :  { %v1140_v19 = vsel %vm1139_vm10, %v2947_v21, %v1138_v5  ;;  %v586_v38 = vperm.slane %v3090_v43, 2  ;;  %v4108_v21 = vld [vmem:[#allocation54_spill] sm:$0xff]  ;;  %v1083_v61 = vperm.slane %v3413_v16, 0 }
 0x263   :  { %1691 = vmatpush.msra.mxu2 %v257_v62  ;;  %1757 = vmatpush.msra.mxu3 %v847_v26  ;;  %v1189_v52 = vmul.f32 %v1181_v23, %v1172_v56  ;;  %v1157_v36 = vmul.f32 %v1149_v29, %v1140_v19  ;;  %v482_v14 = vsel %vm477_vm4, %v4087_v8, %v4108_v21  ;;  %v1118_v62 = vperm.slane %v3402_v10, 3 }
 0x264   :  { %1692 = vmatmul.f32.vlgmr.msra.gmra.mxu2 %v3493_v4  ;;  %v598_v13 = vmul.f32 %v586_v38, %v4107_v17  ;;  %v507_v5 = vmul.f32 %v495_v28, %v482_v14  ;;  %v1021_v23 = vperm.slane %v2885_v50, 2  ;;  %v1085_v56 = vperm.slane %v3413_v16, 2 }
 0x265   :  { %1758 = vmatpush.msra.mxu3 %v764_v57  ;;  %v3544_v57 = vld [vmem:[#allocation7 + $0x18] sm:$0xff]  ;;  %v1086_v29 = vperm.slane %v3413_v16, 3 }
 0x266   :  { %1591 = vmatmul.f32.gmra.mxu0 %v3544_v57  ;;  %1669 = vmatmul.f32.gmra.mxu3 %v3544_v57 }
 0x267   :  { %v1106_v49 = vpop.permute.xlu0 %1105  ;;  %v3513_v33 = vpop.permute.xlu2 %911  ;;  %1759 = vmatpush.msra.mxu3 %v4106_v2 }
 0x268   :  { %v1111_v45 = vsel %vm1107_vm7, %v1106_v49, %v3356_v1  ;;  %v1117_v1 = vperm.slane %v3402_v10, 2 }
 0x269   :  { %1760 = vmatpush.msra.mxu3 %v1189_v52  ;;  %v1123_v22 = vmul.f32 %v1115_v60, %v1111_v45  ;;  %v4110_v52 = vld [vmem:[#allocation45_spill] sm:$0xff]  ;;  %v4112_v45 = vld [vmem:[#allocation67_spill] sm:$0xff] }
 0x26b   :  { %1609 = vmatpush.msrb.mxu1 %v1123_v22  ;;  %1761 = vmatpush.msra.mxu3 %v1157_v36  ;;  %v3573_v22 = vld [vmem:[#allocation3 + $0x20] ss:$8 sm:$0xf] }
 0x26c   :  { %v412_v17 = vperm.slane %v3573_v22, 2 }
 0x26d   :  { %1762 = vmatpush.msra.mxu3 %v598_v13 }
 0x26f   :  { %v1074_v51 = vpop.permute.xlu0 %1073  ;;  %v1104_v18 = vpop.permute.xlu2 %1103  ;;  %1763 = vmatpush.msra.mxu3 %v2401_v11  ;;  %v3548_v11 = vld [vmem:[#allocation7 + $0x20] sm:$0xff] }
 0x270   :  { %v1079_v8 = vsel %vm1075_vm5, %v1074_v51, %v3392_v34  ;;  %v1108_v40 = vsel %vm1107_vm7, %v1104_v18, %v1106_v49  ;;  %v1109_v10 = vsel %vm1107_vm7, %v3015_v31, %v1104_v18  ;;  %v3550_v34 = vpop.permute.xlu1 %1359  ;;  %1695 = vmatmul.f32.gmra.mxu2 %v3548_v11  ;;  %v4109_v31 = vld [vmem:[#allocation52_spill] sm:$0xff]  ;;  %v4111_v49 = vld [vmem:[#allocation47_spill] sm:$0xff] }
 0x271   :  { %v1125_v44 = vmul.f32 %v1117_v1, %v1109_v10  ;;  %v3542_v26 = vmul.f32 %v1118_v62, %v1108_v40  ;;  %1764 = vmatpush.msra.mxu3 %v507_v5  ;;  %v1091_v12 = vmul.f32 %v1083_v61, %v1079_v8  ;;  %v399_v2 = vsel %vm394_vm3, %v4095_v41, %v4111_v49  ;;  %v4113_v41 = vld [vmem:[#allocation40_spill] sm:$0xff]  ;;  %v3579_v1 = vld [vmem:[#allocation7 + $0x30] sm:$0xf]  ;;  %v4114_v62 = vld [vmem:[#allocation41_spill] sm:$0xff] }
 0x272   :  { %v316_v61 = vsel %vm311_vm1, %v4097_v47, %v4114_v62  ;;  %1594 = vmatmul.f32.gmra.mxu0 %v3579_v1  ;;  %v3593_v18 = vld [vmem:[#allocation7 + $0x38] sm:$0xf]  ;;  %1672 = vmatmul.f32.gmra.mxu3 %v3579_v1  ;;  %v1545_v47 = vld [vmem:[%s3879_s6 + $0x8] sm:$0xff]  ;;  %v989_v40 = vperm.slane %v2892_v35, 2 }
 0x273   :  { %1610 = vmatpush.msrb.mxu1 %v1091_v12  ;;  %1765 = vmatpush.msra.mxu3 %v1125_v44  ;;  %v4115_v12 = vld [vmem:[#allocation70_spill] sm:$0xff] }
 0x274   :  { %1554 = vperm.xlu1 %1989, %v1545_v47  }
 0x275   :  { %1611 = vmatpush.msrb.mxu1 %v4109_v31 }
 0x277   :  { %v3557_v60 = vpop.permute.xlu0 %1007  ;;  %1612 = vmatpush.msrb.mxu1 %v4110_v52  ;;  %v4117_v52 = vld [vmem:[#allocation76_spill] sm:$0xff] }
 0x278   :  { %v1072_v19 = vpop.permute.xlu2 %1071  ;;  %v1013_v36 = vsel %vm1011_vm8, %v4112_v45, %v3557_v60  ;;  %1698 = vmatmul.f32.gmra.mxu2 %v3593_v18  ;;  %v733_v10 = vpop.permute.xlu1 %732  ;;  %v917_v49 = vsel %vm915_vm11, %v4117_v52, %v3513_v33 }
 0x279   :  { %v1076_v50 = vsel %vm1075_vm5, %v1072_v19, %v1074_v51  ;;  %v1077_v16 = vsel %vm1075_vm5, %v3029_v20, %v1072_v19  ;;  %v1029_v13 = vmul.f32 %v1021_v23, %v1013_v36  ;;  %1613 = vmatpush.msrb.mxu1 %v4113_v41  ;;  %v3587_v20 = vld [vmem:[#allocation3 + $0x7] ss:$8 sm:$0xf]  ;;  %v424_v51 = vmul.f32 %v412_v17, %v399_v2 }
 0x27a   :  { %v1093_v21 = vmul.f32 %v1085_v56, %v1077_v16  ;;  %v3576_v14 = vmul.f32 %v1086_v29, %v1076_v50  ;;  %1614 = vmatmul.f32.vlgmr.msrb.gmra.mxu1 %v3493_v4  ;;  %v329_v5 = vperm.slane %v3587_v20, 2  ;;  %v772_v23 = vperm.slane %v2926_v24, 3  ;;  %v4116_v19 = vld [vmem:[#allocation37_spill] sm:$0xff]  ;;  %v4119_v36 = vld [vmem:[#allocation78_spill] sm:$0xff]  ;;  %v4121_v41 = vld [vmem:[#allocation31_spill] sm:$0xff] }
 0x27b   :  { %1728 = vmatpush.msra.mxu1 %v2994_v59  ;;  %v925_v56 = vperm.slane %v2924_v48, 2  ;;  %v746_v35 = vsel %vm734_vm12, %v733_v10, %v2592_v27  ;;  %v4118_v48 = vld [vmem:[#allocation83_spill] sm:$0xff]  ;;  %v855_v50 = vperm.slane %v4119_v36, 3  ;;  %v4120_v27 = vld [vmem:[#allocation80_spill] sm:$0xff]  ;;  %vm4127_vm5 = vcmp.lt.s32.totalorder %v2282_v30, 95 }
 0x27c   :  { %1766 = vmatpush.msra.mxu3 %v1093_v21  ;;  %v341_v8 = vmul.f32 %v329_v5, %v316_v61  ;;  %v780_v2 = vadd.f32 %v772_v23, %v746_v35  ;;  %v770_v61 = vperm.slane %v2926_v24, 1  ;;  %v4123_v35 = vld [vmem:[#allocation53_spill] sm:$0xff] }
 0x27d   :  { %1729 = vmatpush.msra.mxu1 %v1029_v13  ;;  %v933_v45 = vmul.f32 %v925_v56, %v917_v49 }
 0x27e   :  { %1767 = vmatpush.msra.mxu3 %v424_v51  ;;  %v784_v62 = vmax.f32 %v4121_v41, %v780_v2  ;;  %v771_v51 = vperm.slane %v2926_v24, 2  ;;  %v853_v24 = vperm.slane %v4119_v36, 1  ;;  %v4125_v2 = vld [vmem:[#allocation30_spill] sm:$0xff] }
 0x27f   :  { %v3603_v59 = vpop.permute.xlu0 %975 }
 0x280   :  { %v3605_v44 = vpop.permute.xlu2 %1327  ;;  %1768 = vmatpush.msra.mxu3 %v341_v8  ;;  %v981_v31 = vsel %vm979_vm9, %v4115_v12, %v3603_v59 }
 0x281   :  { %v997_v29 = vmul.f32 %v989_v40, %v981_v31  ;;  %v4122_v40 = vld [vmem:[#allocation46_spill] sm:$0xff] }
 0x282   :  { %1769 = vmatpush.msra.mxu3 %v4116_v19  ;;  %1617 = vmatmul.f32.gmra.mxu1 %v3548_v11 }
 0x283   :  { %1730 = vmatpush.msra.mxu1 %v997_v29  ;;  %1770 = vmatmul.f32.vlgmr.msra.gmra.mxu3 %v3493_v4 }
 0x285   :  { %1731 = vmatpush.msra.mxu1 %v4118_v48 }
 0x287   :  { %v727_v16 = vpop.permute.xlu0 %726  ;;  %1732 = vmatpush.msra.mxu1 %v933_v45 }
 0x288   :  { %v816_v13 = vpop.permute.xlu2 %815  ;;  %v737_v8 = vsel %vm734_vm12, %v727_v16, %v733_v10  ;;  %v740_v12 = vsel %vm734_vm12, %v4122_v40, %v727_v16  ;;  %v1372_v10 = vperm.slane %v3236_v46, 1  ;;  %v1340_v16 = vperm.slane %v3288_v37, 1 }
 0x289   :  { %v829_v21 = vsel %vm817_vm13, %v816_v13, %v4120_v27  ;;  %1733 = vmatpush.msra.mxu1 %v3081_v53  ;;  %v778_v23 = vadd.f32 %v770_v61, %v740_v12  ;;  %v779_v56 = vadd.f32 %v771_v51, %v737_v8  ;;  %v854_v53 = vperm.slane %v4119_v36, 2  ;;  %v4129_v8 = vld [vmem:[#allocation60_spill] sm:$0xff]  ;;  %v4130_v12 = vld [vmem:[#allocation42_spill] sm:$0xff] }
 0x28a   :  { %v863_v47 = vadd.f32 %v855_v50, %v829_v21  ;;  %1620 = vmatmul.f32.gmra.mxu1 %v3593_v18  ;;  %v1365_v36 = vsel %vm4126_vm2, %v4061_v7, %v3550_v34  ;;  %v1308_v40 = vperm.slane %v3312_v0, 1 }
 0x28b   :  { %1734 = vmatpush.msra.mxu1 %v3137_v54  ;;  %1773 = vmatmul.f32.gmra.mxu3 %v3548_v11  ;;  %v4124_v54 = vld [vmem:[#allocation26_spill] sm:$0xff]  ;;  %v783_v45 = vmax.f32 %v4125_v2, %v779_v56  ;;  %v1380_v41 = vmul.f32 %v1372_v10, %v1365_v36  ;;  %v4132_v56 = vld [vmem:[#allocation17_spill] sm:$0xff]  ;;  %v4138_v2 = vld [vmem:[#allocation79_spill] sm:$0xff] }
 0x28c   :  { %v867_v31 = vmax.f32 %v784_v62, %v863_v47  ;;  %v782_v49 = vmax.f32 %v4124_v54, %v778_v23  ;;  %v4137_v54 = vld [vmem:[#allocation14_spill] sm:$0xff]  ;;  %v4139_v36 = vld [vmem:[#allocation81_spill] sm:$0xff] }
 0x28e   :  { %1870 = vmatpush.msrb.mxu3 %v867_v31  ;;  %v481_v31 = vsel %vm477_vm4, %v2501_v39, %v4130_v12  ;;  %v1997_v39 = vld [vmem:[#allocation3 + $0x4] ss:$8 sm:$0xf]  ;;  %vm4148_vm4 = vmmov %vm4127_vm5 }
 0x28f   :  { %v810_v29 = vpop.permute.xlu0 %809  ;;  %v1022_v10 = vperm.slane %v1997_v39, 3  ;;  %v4145_v12 = vld [vmem:[#allocation48_spill] sm:$0xff] }
 0x290   :  { %v820_v19 = vsel %vm817_vm13, %v810_v29, %v816_v13  ;;  %v823_v52 = vsel %vm817_vm13, %v4123_v35, %v810_v29  ;;  %v1333_v13 = vsel %vm4127_vm5, %v3301_v25, %v3605_v44  ;;  %v4128_v25 = vld [vmem:[#allocation51_spill] sm:$0xff]  ;;  %vm4134_vm13 = vcmp.lt.s32.totalorder %v2282_v30, 96 }
 0x291   :  { %v861_v48 = vadd.f32 %v853_v24, %v823_v52  ;;  %v862_v50 = vadd.f32 %v854_v53, %v820_v19  ;;  %v1348_v62 = vmul.f32 %v1340_v16, %v1333_v13  ;;  %v594_v47 = vmul.f32 %v586_v38, %v4128_v25  ;;  %v4133_v24 = vld [vmem:[#allocation73_spill] sm:$0xff]  ;;  %v4135_v35 = vld [vmem:[#allocation11_spill] sm:$0xff] }
 0x292   :  { %v503_v29 = vmul.f32 %v495_v28, %v481_v31  ;;  %v4136_v52 = vld [vmem:[#allocation33_spill] sm:$0xff]  ;;  %v980_v16 = vsel %vm979_vm9, %v3603_v59, %v4139_v36  ;;  %v1342_v59 = vperm.slane %v3288_v37, 3  ;;  %v1341_v31 = vperm.slane %v3288_v37, 2  ;;  %vm4154_vm9 = vmmov %vm4134_vm13 }
 0x293   :  { %v865_v27 = vmax.f32 %v782_v49, %v861_v48  ;;  %v866_v21 = vmax.f32 %v783_v45, %v862_v50  ;;  %1776 = vmatmul.f32.gmra.mxu3 %v3593_v18  ;;  %v315_v49 = vsel %vm311_vm1, %v4137_v54, %v4136_v52  ;;  %v1012_v45 = vsel %vm1011_vm8, %v3557_v60, %v4138_v2  ;;  %v1998_v50 = vld [vmem:[#allocation3 + $0x3] ss:$8 sm:$0xf]  ;;  %v1999_v25 = vld [vmem:[#allocation3 + $0x1] ss:$8 sm:$0xf]  ;;  %vm4142_vm1 = vmmov %vm4126_vm2 }
 0x294   :  { %v990_v28 = vperm.slane %v1998_v50, 3  ;;  %v1030_v13 = vmul.f32 %v1022_v10, %v1012_v45  ;;  %v4141_v60 = vld [vmem:[#allocation82_spill] sm:$0xff]  ;;  %vm4150_vm8 = vmmov %vm4148_vm4  ;;  %v1309_v37 = vperm.slane %v3312_v0, 2  ;;  %v4151_v10 = vld [vmem:[#allocation84_spill] sm:$0xff] }
 0x295   :  { %1714 = vmatpush.msra.mxu0 %v865_v27  ;;  %1792 = vmatpush.msrb.mxu2 %v866_v21  ;;  %v4140_v27 = vld [vmem:[#allocation91_spill] sm:$0xff]  ;;  %v337_v21 = vmul.f32 %v329_v5, %v315_v49  ;;  %v4153_v52 = vld [vmem:[#allocation69_spill] sm:$0xff]  ;;  %v4157_v50 = vld [vmem:[#allocation66_spill] sm:$0xff] }
 0x297   :  { %1715 = vmatpush.msra.mxu0 %v1380_v41  ;;  %v1374_v41 = vperm.slane %v3236_v46, 3 }
 0x298   :  { %v3660_v61 = vpop.permute.xlu0 %728 }
 0x299   :  { %v735_v7 = vsel %vm734_vm12, %v2769_v63, %v3660_v61  ;;  %1716 = vmatpush.msra.mxu0 %v1348_v62  ;;  %v1546_v63 = vld [vmem:[%s3879_s6 + $0x10] sm:$0xf]  ;;  %v1330_v62 = vpop.permute.xlu1 %1329 }
 0x29a   :  { %v760_v51 = vmul.f32 %v752_v15, %v735_v7  ;;  %v4131_v15 = vld [vmem:[#allocation36_spill] sm:$0xff]  ;;  %1559 = vperm.xlu2 %1990, %v1546_v63   ;;  %v998_v7 = vmul.f32 %v990_v28, %v980_v16  ;;  %v1298_v63 = vpop.permute.xlu2 %1297  ;;  %v1332_v39 = vsel %vm4150_vm8, %v3605_v44, %v1330_v62  ;;  %v4156_v44 = vld [vmem:[#allocation90_spill] sm:$0xff] }
 0x29b   :  { %v398_v38 = vsel %vm394_vm3, %v4132_v56, %v4131_v15  ;;  %vm4144_vm3 = vmmov %vm4142_vm1  ;;  %v1303_v54 = vsel %vm4154_vm9, %v1298_v63, %v4153_v52  ;;  %v1214_v45 = vperm.slane %v4156_v44, 3  ;;  %v4159_v28 = vld [vmem:[#allocation68_spill] sm:$0xff] }
 0x29c   :  { %1735 = vmatpush.msra.mxu1 %v760_v51  ;;  %v420_v48 = vmul.f32 %v412_v17, %v398_v38  ;;  %v1373_v17 = vperm.slane %v3236_v46, 2  ;;  %v916_v46 = vsel %vm915_vm11, %v3513_v33, %v4145_v12  ;;  %v4146_v38 = vld [vmem:[#allocation25_spill] sm:$0xff]  ;;  %v1310_v33 = vperm.slane %v3312_v0, 3  ;;  %vm4155_vm11 = vmmov %vm4154_vm9  ;;  %v4158_v0 = vld [vmem:[#allocation15_spill] sm:$0xff] }
 0x29d   :  { %v4160_v16 = vld [vmem:[#allocation64_spill] sm:$0xff] }
 0x29e   :  { %1736 = vmatpush.msra.mxu1 %v4129_v8  ;;  %v4143_v8 = vld [vmem:[#allocation62_spill] sm:$0xff] }
 0x2a0   :  { %v1296_v23 = vpop.permute.xlu0 %1295  ;;  %1737 = vmatpush.msra.mxu1 %v594_v47  ;;  %v926_v47 = vperm.slane %v1999_v25, 3  ;;  %v4165_v25 = vld [vmem:[#allocation74_spill] sm:$0xff] }
 0x2a1   :  { %v1301_v53 = vsel %vm4134_vm13, %v4133_v24, %v1296_v23  ;;  %v4147_v24 = vld [vmem:[#allocation89_spill] sm:$0xff]  ;;  %v1300_v49 = vsel %vm4155_vm11, %v1296_v23, %v1298_v63  ;;  %v4171_v63 = vld [vmem:[#allocation72_spill] sm:$0xff] }
 0x2a2   :  { %v1316_v19 = vmul.f32 %v1308_v40, %v1301_v53  ;;  %1738 = vmatpush.msra.mxu1 %v4135_v35  ;;  %v4149_v53 = vld [vmem:[#allocation86_spill] sm:$0xff]  ;;  %v934_v35 = vmul.f32 %v926_v47, %v916_v46  ;;  %v4170_v46 = vld [vmem:[#allocation61_spill] sm:$0xff] }
 0x2a3   :  { %v4166_v47 = vld [vmem:[#allocation22_spill] sm:$0xff] }
 0x2a4   :  { %1717 = vmatpush.msra.mxu0 %v1316_v19  ;;  %1739 = vmatpush.msra.mxu1 %v503_v29  ;;  %v1246_v29 = vperm.slane %v4149_v53, 3  ;;  %v4152_v19 = vld [vmem:[#allocation88_spill] sm:$0xff] }
 0x2a5   :  { %1926 = vmatmul.msk.f32.vlgmr.msra.gmra.mxu0 %vm1562_vm15, %v4140_v27 }
 0x2a6   :  { %1806 = vmatpush.msrb.mxu0 %v4141_v60  ;;  %1740 = vmatpush.msra.mxu1 %v420_v48  ;;  %v1349_v48 = vmul.f32 %v1341_v31, %v1332_v39  ;;  %v1254_v36 = vmul.f32 %v1246_v29, %v4159_v28  ;;  %v1317_v60 = vmul.f32 %v1309_v37, %v1300_v49  ;;  %v1150_v31 = vperm.slane %v3363_v9, 3  ;;  %v4178_v29 = vld [vmem:[#allocation35_spill] sm:$0xff]  ;;  %v4181_v37 = vld [vmem:[#allocation29_spill] sm:$0xff] }
 0x2a8   :  { %1807 = vmatpush.msrb.mxu0 %v1030_v13  ;;  %v1362_v51 = vpop.permute.xlu0 %1361  ;;  %1741 = vmatpush.msra.mxu1 %v337_v21  ;;  %v1318_v21 = vmul.f32 %v1310_v33, %v1303_v54  ;;  %v4161_v13 = vld [vmem:[#allocation63_spill] sm:$0xff]  ;;  %v4180_v33 = vld [vmem:[#allocation13_spill] sm:$0xff] }
 0x2a9   :  { %v1364_v5 = vsel %vm4142_vm1, %v3550_v34, %v1362_v51  ;;  %v1367_v40 = vsel %vm4144_vm3, %v1362_v51, %v4143_v8  ;;  %v1335_v34 = vsel %vm4148_vm4, %v1330_v62, %v4147_v24  ;;  %v744_v23 = vsel %vm734_vm12, %v3660_v61, %v4161_v13  ;;  %v4163_v62 = vld [vmem:[#allocation65_spill] sm:$0xff]  ;;  %v4174_v24 = vld [vmem:[#allocation58_spill] sm:$0xff]  ;;  %v4185_v54 = vld [vmem:[#allocation39_spill] sm:$0xff] }
 0x2aa   :  { %v1381_v15 = vmul.f32 %v1373_v17, %v1364_v5  ;;  %v1382_v56 = vmul.f32 %v1374_v41, %v1367_v40  ;;  %1808 = vmatpush.msrb.mxu0 %v998_v7  ;;  %1742 = vmatpush.msra.mxu1 %v4146_v38  ;;  %v1350_v2 = vmul.f32 %v1342_v59, %v1335_v34  ;;  %v753_v17 = vperm.slane %v3073_v3, 3  ;;  %v4162_v41 = vld [vmem:[#allocation85_spill] sm:$0xff]  ;;  %v4164_v59 = vld [vmem:[#allocation87_spill] sm:$0xff]  ;;  %v4173_v38 = vld [vmem:[#allocation32_spill] sm:$0xff] }
 0x2ab   :  { %v1222_v7 = vmul.f32 %v1214_v45, %v4163_v62  ;;  %v587_v61 = vperm.slane %v3090_v43, 3  ;;  %v745_v3 = vsel %vm734_vm12, %v2969_v6, %v4165_v25  ;;  %v4167_v5 = vld [vmem:[#allocation49_spill] sm:$0xff]  ;;  %v4169_v40 = vld [vmem:[#allocation75_spill] sm:$0xff]  ;;  %v496_v6 = vperm.slane %v3115_v58, 3  ;;  %v4172_v58 = vld [vmem:[#allocation44_spill] sm:$0xff] }
 0x2ac   :  { %1809 = vmatpush.msrb.mxu0 %v4151_v10  ;;  %1743 = vmatpush.msra.mxu1 %v4152_v19  ;;  %v761_v51 = vmul.f32 %v753_v17, %v744_v23  ;;  %v578_v8 = vsel %vm4168_vm0, %v4167_v5, %v4166_v47  ;;  %v765_v43 = vmul.f32 %v753_v17, %v745_v3  ;;  %vm4175_vm12 = vmmov %vm4168_vm0  ;;  %v4176_v34 = vld [vmem:[#allocation12_spill] sm:$0xff]  ;;  %v1667_v23 = vpop.f32.mrf.mxu3 }
 0x2ad   :  { %1793 = vmatpush.msrb.mxu2 %v1381_v15  ;;  %1871 = vmatpush.msrb.mxu3 %v1382_v56  ;;  %v595_v12 = vmul.f32 %v587_v61, %v578_v8  ;;  %v330_v15 = vperm.slane %v3587_v20, 3  ;;  %v504_v56 = vmul.f32 %v496_v6, %v4172_v58  ;;  %v579_v9 = vsel %vm4175_vm12, %v4174_v24, %v4173_v38  ;;  %v4182_v10 = vld [vmem:[#allocation28_spill] sm:$0xff] }
 0x2ae   :  { %1927 = vmatmul.msk.f32.gmra.mxu0 %vm1562_vm15, %v4157_v50  ;;  %1744 = vmatmul.f32.vlgmr.msra.gmra.mxu1 %v4158_v0  ;;  %v599_v20 = vmul.f32 %v587_v61, %v579_v9 }
 0x2af   :  { %1810 = vmatpush.msrb.mxu0 %v934_v35  ;;  %1832 = vmatpush.msrb.mxu1 %v4160_v16  ;;  %v338_v30 = vmul.f32 %v330_v15, %v4178_v29  ;;  %v4184_v35 = vld [vmem:[#allocation43_spill] sm:$0xff] }
 0x2b0   :  { %1794 = vmatpush.msrb.mxu2 %v1349_v48  ;;  %1872 = vmatpush.msrb.mxu3 %v1350_v2  ;;  %v342_v52 = vmul.f32 %v330_v15, %v4184_v35  ;;  %v3819_v49 = vpop.permute.xlu0 %1549 }
 0x2b1   :  { %1811 = vmatpush.msrb.mxu0 %v4162_v41  ;;  %1833 = vmatpush.msrb.mxu1 %v1254_v36  ;;  %v1668_v25 = vadd.f32 %v1667_v23, %v3819_v49 }
 0x2b2   :  { %1795 = vmatpush.msrb.mxu2 %v1317_v60  ;;  %1873 = vmatpush.msrb.mxu3 %v1318_v21 }
 0x2b3   :  { %1929 = vmatmul.msk.f32.vlgmr.msrb.gmra.mxu2 %vm1562_vm15, %v4140_v27  ;;  %1812 = vmatpush.msrb.mxu0 %v4164_v59 }
 0x2b4   :  { %1941 = vmatpush.msra.mxu2 %v4160_v16  ;;  %1834 = vmatpush.msrb.mxu1 %v1222_v7 }
 0x2b5   :  { %1813 = vmatpush.msrb.mxu0 %v761_v51  ;;  %1932 = vmatmul.msk.f32.vlgmr.msrb.gmra.mxu3 %vm1562_vm15, %v4140_v27  ;;  %v413_v27 = vperm.slane %v3573_v22, 3  ;;  %v1158_v22 = vmul.f32 %v1150_v31, %v3491_v55  ;;  %v4179_v55 = vld [vmem:[#allocation56_spill] sm:$0xff] }
 0x2b6   :  { %1942 = vmatpush.msra.mxu2 %v1254_v36  ;;  %1835 = vmatpush.msrb.mxu1 %v3499_v42  ;;  %v508_v39 = vmul.f32 %v496_v6, %v4179_v55 }
 0x2b7   :  { %1928 = vmatmul.msk.f32.gmra.mxu0 %vm1562_vm15, %v4169_v40  ;;  %1747 = vmatmul.f32.gmra.mxu1 %v3544_v57 }
 0x2b8   :  { %1814 = vmatpush.msrb.mxu0 %v4170_v46  ;;  %1943 = vmatpush.msra.mxu2 %v1222_v7 }
 0x2b9   :  { %1836 = vmatpush.msrb.mxu1 %v765_v43 }
 0x2ba   :  { %1815 = vmatpush.msrb.mxu0 %v595_v12  ;;  %1944 = vmatpush.msra.mxu2 %v3499_v42  ;;  %v4177_v42 = vld [vmem:[#allocation38_spill] sm:$0xff] }
 0x2bb   :  { %1837 = vmatpush.msrb.mxu1 %v4171_v63  ;;  %1930 = vmatmul.msk.f32.gmra.mxu2 %vm1562_vm15, %v4157_v50  ;;  %v421_v53 = vmul.f32 %v413_v27, %v4177_v42 }
 0x2bc   :  { %1816 = vmatpush.msrb.mxu0 %v4176_v34  ;;  %1945 = vmatpush.msra.mxu2 %v765_v43 }
 0x2bd   :  { %1838 = vmatpush.msrb.mxu1 %v3461_v32  ;;  %1933 = vmatmul.msk.f32.gmra.mxu3 %vm1562_vm15, %v4157_v50 }
 0x2be   :  { %1817 = vmatpush.msrb.mxu0 %v504_v56  ;;  %1946 = vmatpush.msra.mxu2 %v4171_v63 }
 0x2bf   :  { %1839 = vmatpush.msrb.mxu1 %v1158_v22 }
 0x2c0   :  { %1818 = vmatpush.msrb.mxu0 %v421_v53  ;;  %1947 = vmatpush.msra.mxu2 %v3461_v32  ;;  %v4183_v32 = vld [vmem:[#allocation50_spill] sm:$0xff] }
 0x2c1   :  { %1840 = vmatpush.msrb.mxu1 %v599_v20  ;;  %v425_v19 = vmul.f32 %v413_v27, %v4183_v32 }
 0x2c2   :  { %1819 = vmatpush.msrb.mxu0 %v338_v30  ;;  %1948 = vmatpush.msra.mxu2 %v1158_v22 }
 0x2c3   :  { %1841 = vmatpush.msrb.mxu1 %v4180_v33  ;;  %1931 = vmatmul.msk.f32.gmra.mxu2 %vm1562_vm15, %v4169_v40 }
 0x2c4   :  { %1820 = vmatpush.msrb.mxu0 %v4181_v37  ;;  %1949 = vmatpush.msra.mxu2 %v599_v20 }
 0x2c5   :  { %1842 = vmatpush.msrb.mxu1 %v508_v39  ;;  %1934 = vmatmul.msk.f32.gmra.mxu3 %vm1562_vm15, %v4169_v40 }
 0x2c6   :  { %1821 = vmatpush.msrb.mxu0 %v4182_v10  ;;  %1950 = vmatpush.msra.mxu2 %v4180_v33 }
 0x2c7   :  { %1843 = vmatpush.msrb.mxu1 %v3542_v26  ;;  %1822 = vmatmul.f32.vlgmr.msrb.gmra.mxu0 %v4158_v0 }
 0x2c8   :  { %1750 = vmatmul.f32.gmra.mxu1 %v3579_v1  ;;  %1951 = vmatpush.msra.mxu2 %v508_v39 }
 0x2c9   :  { %1844 = vmatpush.msrb.mxu1 %v3576_v14 }
 0x2ca   :  { %1952 = vmatpush.msra.mxu2 %v3542_v26  ;;  %v1589_v26 = vpop.f32.mrf.mxu0 }
 0x2cb   :  { %1845 = vmatpush.msrb.mxu1 %v425_v19  ;;  %v1590_v2 = vadd.f32 %v1589_v26, %v3819_v49 }
 0x2cc   :  { %1953 = vmatpush.msra.mxu2 %v3576_v14  ;;  %v1641_v14 = vpop.f32.mrf.mxu2 }
 0x2cd   :  { %1846 = vmatpush.msrb.mxu1 %v342_v52 }
 0x2ce   :  { %1954 = vmatpush.msra.mxu2 %v425_v19 }
 0x2cf   :  { %1847 = vmatpush.msrb.mxu1 %v4185_v54  ;;  %1825 = vmatmul.f32.gmra.mxu0 %v3544_v57 }
 0x2d0   :  { %1848 = vmatmul.f32.vlgmr.msrb.gmra.mxu1 %v3493_v4  ;;  %1955 = vmatpush.msra.mxu2 %v342_v52 }
 0x2d2   :  { %1956 = vmatpush.msra.mxu2 %v4185_v54 }
 0x2d3   :  { %1854 = vmatmul.f32.vlgmr.msra.gmra.mxu2 %v3593_v18 }
 0x2d7   :  { %1828 = vmatmul.f32.gmra.mxu0 %v3579_v1 }
 0x2d8   :  { %1851 = vmatmul.f32.gmra.mxu1 %v3548_v11  ;;  %v1644_v11 = vpop.f32.mrf.mxu2 }
 0x2e0   :  { %v1647_v41 = vpop.f32.mrf.mxu2 }
 0x2e3   :  { %v1592_v45 = vpop.f32.mrf.mxu0 }
 0x2e6   :  { %v3822_v48 = vpop.permute.xlu1 %1554 }
 0x2e7   :  { %v1593_v0 = vadd.f32 %v1592_v45, %v3822_v48 }
 0x2e8   :  { %v1693_v61 = vpop.f32.mrf.mxu2 }
 0x2e9   :  { %v1670_v51 = vpop.f32.mrf.mxu3  ;;  %v1694_v3 = vadd.f32 %v1693_v61, %v1668_v25 }
 0x2ea   :  { %v1671_v6 = vadd.f32 %v1670_v51, %v3822_v48 }
 0x2ef   :  { %v1595_v28 = vpop.f32.mrf.mxu0 }
 0x2f3   :  { %v1696_v8 = vpop.f32.mrf.mxu2 }
 0x2f4   :  { %v3828_v36 = vpop.permute.xlu2 %1559  ;;  %v1697_v12 = vadd.f32 %v1696_v8, %v1671_v6 }
 0x2f5   :  { %v1596_v13 = vadd.f32 %v1595_v28, %v3828_v36  ;;  %v1673_v59 = vpop.f32.mrf.mxu3 }
 0x2f6   :  { %v1674_v56 = vadd.f32 %v1673_v59, %v3828_v36 }
 0x2f7   :  { %v1615_v44 = vpop.f32.mrf.mxu1 }
 0x2f8   :  { %v1616_v57 = vadd.f32 %v1615_v44, %v1590_v2 }
 0x2fa   :  { %v1642_v4 = vadd.f32 %v1641_v14, %v1616_v57 }
 0x2fb   :  { %v1699_v15 = vpop.f32.mrf.mxu2 }
 0x2fc   :  { %v1884_v50 = vmax.f32 %v1642_v4, 0.0  ;;  %v1700_v24 = vadd.f32 %v1699_v15, %v1674_v56 }
 0x2fe   :  { %1896 = vst [vmem:[%s3880_s7] sm:$0xff] %v1884_v50 }
 0x2ff   :  { %v1618_v1 = vpop.f32.mrf.mxu1 }
 0x300   :  { %v1619_v18 = vadd.f32 %v1618_v1, %v1593_v0 }
 0x302   :  { %v1645_v16 = vadd.f32 %v1644_v11, %v1619_v18 }
 0x304   :  { %v1888_v21 = vmax.f32 %v1645_v16, 0.0 }
 0x306   :  { %1898 = vst [vmem:[%s3880_s7 + $0x10] sm:$0xff] %v1888_v21  ;;  %v1771_v43 = vpop.f32.mrf.mxu3 }
 0x307   :  { %v1621_v60 = vpop.f32.mrf.mxu1 }
 0x308   :  { %v1622_v17 = vadd.f32 %v1621_v60, %v1596_v13 }
 0x30a   :  { %v1648_v62 = vadd.f32 %v1647_v41, %v1622_v17 }
 0x30c   :  { %v1892_v7 = vmax.f32 %v1648_v62, 0.0 }
 0x30e   :  { %1900 = vst [vmem:[%s3880_s7 + $0x20] sm:$0xf] %v1892_v7  ;;  %v1774_v58 = vpop.f32.mrf.mxu3 }
 0x316   :  { %v1777_v30 = vpop.f32.mrf.mxu3 }
 0x322   :  { %v1719_v47 = vpop.f32.mrf.mxu0 }
 0x323   :  { %v1720_v5 = vadd.f32 %v1719_v47, %v1694_v3 }
 0x325   :  { %v1885_v40 = vmax.f32 %v1720_v5, 0.0 }
 0x327   :  { %1897 = vst [vmem:[%s3880_s7 + $0x8] sm:$0xff] %v1885_v40 }
 0x32b   :  { %v1722_v46 = vpop.f32.mrf.mxu0  ;;  %v1745_v27 = vpop.f32.mrf.mxu1 }
 0x32c   :  { %v1723_v31 = vadd.f32 %v1722_v46, %v1697_v12  ;;  %v1746_v38 = vadd.f32 %v1745_v27, %v3819_v49 }
 0x32e   :  { %v1889_v63 = vmax.f32 %v1723_v31, 0.0  ;;  %v1772_v34 = vadd.f32 %v1771_v43, %v1746_v38 }
 0x330   :  { %1899 = vst [vmem:[%s3880_s7 + $0x18] sm:$0xff] %v1889_v63 }
 0x334   :  { %v1725_v9 = vpop.f32.mrf.mxu0  ;;  %v1748_v53 = vpop.f32.mrf.mxu1 }
 0x335   :  { %v1726_v22 = vadd.f32 %v1725_v9, %v1700_v24  ;;  %v1749_v39 = vadd.f32 %v1748_v53, %v3822_v48 }
 0x336   :  { %v1797_v42 = vpop.f32.mrf.mxu2 }
 0x337   :  { %v1893_v20 = vmax.f32 %v1726_v22, 0.0  ;;  %v1798_v29 = vadd.f32 %v1797_v42, %v1772_v34  ;;  %v1775_v33 = vadd.f32 %v1774_v58, %v1749_v39 }
 0x338   :  { %v1875_v19 = vpop.f32.mrf.mxu3 }
 0x339   :  { %1901 = vst [vmem:[%s3880_s7 + $0x28] sm:$0xf] %v1893_v20  ;;  %v1886_v55 = vmax.f32 %v1798_v29, 0.0 }
 0x33b   :  { %1935 = vst [vmem:[%s3880_s7 + $0x30] sm:$0xff] %v1886_v55 }
 0x33e   :  { %v1800_v37 = vpop.f32.mrf.mxu2 }
 0x33f   :  { %v1801_v10 = vadd.f32 %v1800_v37, %v1775_v33 }
 0x340   :  { %v1878_v4 = vpop.f32.mrf.mxu3 }
 0x341   :  { %v1890_v32 = vmax.f32 %v1801_v10, 0.0 }
 0x343   :  { %1937 = vst [vmem:[%s3880_s7 + $0x40] sm:$0xff] %v1890_v32 }
 0x344   :  { %v1823_v35 = vpop.f32.mrf.mxu0 }
 0x345   :  { %v1751_v52 = vpop.f32.mrf.mxu1  ;;  %v1824_v44 = vadd.f32 %v1823_v35, %v3819_v49 }
 0x346   :  { %v1752_v54 = vadd.f32 %v1751_v52, %v3828_v36  ;;  %v1803_v26 = vpop.f32.mrf.mxu2 }
 0x348   :  { %v1778_v14 = vadd.f32 %v1777_v30, %v1752_v54  ;;  %v1881_v23 = vpop.f32.mrf.mxu3 }
 0x34a   :  { %v1804_v2 = vadd.f32 %v1803_v26, %v1778_v14 }
 0x34c   :  { %v1894_v45 = vmax.f32 %v1804_v2, 0.0  ;;  %v1826_v57 = vpop.f32.mrf.mxu0 }
 0x34d   :  { %v1849_v50 = vpop.f32.mrf.mxu1  ;;  %v1827_v18 = vadd.f32 %v1826_v57, %v3822_v48 }
 0x34e   :  { %1939 = vst [vmem:[%s3880_s7 + $0x50] sm:$0xf] %v1894_v45  ;;  %v1850_v0 = vadd.f32 %v1849_v50, %v1824_v44 }
 0x350   :  { %v1876_v11 = vadd.f32 %v1875_v19, %v1850_v0 }
 0x352   :  { %v1887_v1 = vmax.f32 %v1876_v11, 0.0 }
 0x354   :  { %1936 = vst [vmem:[%s3880_s7 + $0x38] sm:$0xff] %v1887_v1  ;;  %v1829_v28 = vpop.f32.mrf.mxu0 }
 0x355   :  { %v1852_v16 = vpop.f32.mrf.mxu1  ;;  %v1830_v49 = vadd.f32 %v1829_v28, %v3828_v36 }
 0x356   :  { %v1853_v21 = vadd.f32 %v1852_v16, %v1827_v18  ;;  %v1855_v13 = vpop.f32.mrf.mxu2 }
 0x357   :  { %v1856_v60 = vadd.f32 %v1855_v13, %v1830_v49 }
 0x358   :  { %v1879_v17 = vadd.f32 %v1878_v4, %v1853_v21 }
 0x359   :  { %v1882_v41 = vadd.f32 %v1881_v23, %v1856_v60 }
 0x35a   :  { %v1891_v62 = vmax.f32 %v1879_v17, 0.0 }
 0x35b   :  { %v1895_v7 = vmax.f32 %v1882_v41, 0.0 }
 0x35c   :  { %1938 = vst [vmem:[%s3880_s7 + $0x48] sm:$0xff] %v1891_v62 }
 0x35d   :  { %1940 = vst [vmem:[%s3880_s7 + $0x58] sm:$0xf] %v1895_v7 }
 0x35e   :  { %1913 = vsyncpa [#allocation4], 1 }
 0x35f   :  { %1914 = vsyncpa [#allocation6], 1 }

</bundles_post_ra>
